<compile_context>
chip_gen: v7x
topology: tpu7x:2x2x1
jax: 0.10.0
libtpu: 0.0.40
codegen_flags: <defaults>
</compile_context>

<pallas_src>
import jax
import jax.numpy as jnp
from jax.experimental import pallas as pl
from jax.experimental.pallas import tpu as pltpu


def _mlp_kernel(
    embed_ref, msa_ref,
    w0_ref, b0_ref,            # layers[0]: Linear(E, E)   (embed branch)
    w1_ref, b1_ref,            # layers[1]: Linear(M, M)   (msa branch)
    w2e_ref, w2m_ref, b2_ref,  # layers[2]: Linear(W*(M+E), 256), split per window
    w3_ref, b3_ref,            # layers[3]: Linear(256, 128)
    w4_ref, b4_ref,            # layers[4]: Linear(128, 16)
    w5_ref, b5_ref,            # layers[5]: Linear(16, 1) + sigmoid (b5 in SMEM)
    out_ref,
    acc_ref,                   # VMEM scratch accumulator [Bt, 256]
):
    e = embed_ref[...]                       # [W, Bt, E]
    m = msa_ref[...]                         # [W, Bt, M]
    W, Bt, E = e.shape
    M = m.shape[-1]
    H2 = acc_ref.shape[-1]
    dd = w0_ref.dtype                        # MXU operand dtype (f32 or bf16)

    # Layers 0/1: fold the window axis into the matmul row dimension.
    e2d = e.reshape(W * Bt, E)               # sublane merge, lane dim unchanged
    m2d = m.reshape(W * Bt, M)
    o1 = jnp.maximum(
        jnp.dot(e2d, w0_ref[...], preferred_element_type=jnp.float32)
        + b0_ref[...], 0.0)                  # [W*Bt, E], one bias broadcast
    o2 = jnp.maximum(
        jnp.dot(m2d, w1_ref[...], preferred_element_type=jnp.float32)
        + b1_ref[...], 0.0)                  # [W*Bt, M]
    o1 = o1.astype(dd)
    o2 = o2.astype(dd)

    # Layer 2: concat((out2, out1), -1) + flatten + Linear(., 256), decomposed
    # into per-window wide-N matmuls on contiguous static row slices.
    # Accumulate into the VMEM scratch so only the current partial lives in
    # vregs (bias folded into the init -> single broadcast).
    acc_ref[...] = jnp.broadcast_to(b2_ref[...], (Bt, H2))
    for win in range(W):                     # static Python loop, fully unrolled
        lo, hi = win * Bt, (win + 1) * Bt
        acc_ref[...] += jnp.dot(o2[lo:hi], w2m_ref[win],
                                preferred_element_type=jnp.float32)
        acc_ref[...] += jnp.dot(o1[lo:hi], w2e_ref[win],
                                preferred_element_type=jnp.float32)

    h = jnp.maximum(acc_ref[...], 0.0)                                     # [Bt, 256]
    h = jnp.maximum(
        jnp.dot(h.astype(dd), w3_ref[...], preferred_element_type=jnp.float32)
        + b3_ref[...], 0.0)                                                # [Bt, 128]
    h = jnp.maximum(
        jnp.dot(h.astype(dd), w4_ref[...], preferred_element_type=jnp.float32)
        + b4_ref[...], 0.0)                                                # [Bt, 16]

    # Final Linear(16, 1) + sigmoid on the VPU/XLU (mul + lane reduce); an MXU
    # push here would fill <1% of the array and only add tail latency.
    logit = jnp.sum(h * w5_ref[...], axis=-1, keepdims=True) + b5_ref[0, 0]  # [Bt,1]
    prob = jax.nn.sigmoid(logit)
    # Lane-dense store: broadcast the result column across the 128-lane tile
    # (unmasked vst + full-lane writeback DMA); wrapper keeps column 0.
    out_ref[...] = jnp.broadcast_to(prob, out_ref.shape).astype(out_ref.dtype)


def mlp_module_forward(embed, msa_embed, params, *, block_b=None,
                       compute_dtype=jnp.float32):
    B, W, E = embed.shape
    M = msa_embed.shape[-1]
    H2 = params["w2"].shape[1]
    H3 = params["w3"].shape[1]
    H4 = params["w4"].shape[1]

    if block_b is None:
        # Fill the MXU rows: up to 128 batch rows per push. 128 is the sweet
        # spot on v5e and keeps vreg pressure comfortable on v6e/v7x (the
        # layer-2 accumulator already lives in VMEM scratch).
        block_b = min(B, 128)
    assert B % block_b == 0, "batch must be divisible by the batch block"

    cd = compute_dtype
    # Window axis to the front so the kernel folds it into the matmul rows.
    embed_t = jnp.transpose(embed, (1, 0, 2)).astype(cd)       # [W, B, E]
    msa_t = jnp.transpose(msa_embed, (1, 0, 2)).astype(cd)     # [W, B, M]

    # Split the flatten-layer weight into per-window (msa, embed) slabs so the
    # kernel never concatenates along the feature axis.  Flattened feature
    # order per window is [msa (M) | embed (E)].
    w2_3d = params["w2"].reshape(W, M + E, H2)
    w2m = w2_3d[:, :M, :].astype(cd)        # [W, M, H2]
    w2e = w2_3d[:, M:, :].astype(cd)        # [W, E, H2]

    def full(shape):
        return pl.BlockSpec(shape, lambda i, s=shape: (0,) * len(s))

    grid_spec = pltpu.PrefetchScalarGridSpec(
        num_scalar_prefetch=0,
        grid=(B // block_b,),
        in_specs=[
            pl.BlockSpec((W, block_b, E), lambda i: (0, i, 0)),   # embed [W,B,E]
            pl.BlockSpec((W, block_b, M), lambda i: (0, i, 0)),   # msa   [W,B,M]
            full((E, E)), full((1, E)),                           # layer 0
            full((M, M)), full((1, M)),                           # layer 1
            full((W, E, H2)), full((W, M, H2)), full((1, H2)),    # layer 2
            full((H2, H3)), full((1, H3)),                        # layer 3
            full((H3, H4)), full((1, H4)),                        # layer 4
            full((1, H4)),                                        # layer 5 weight (row)
            pl.BlockSpec(memory_space=pltpu.MemorySpace.SMEM),    # layer 5 bias
        ],
        out_specs=pl.BlockSpec((block_b, 128), lambda i: (i, 0)),
        scratch_shapes=[pltpu.VMEM((block_b, H2), jnp.float32)],
    )

    out_padded = pl.pallas_call(
        _mlp_kernel,
        out_shape=jax.ShapeDtypeStruct((B, 128), jnp.float32),
        grid_spec=grid_spec,
        compiler_params=pltpu.CompilerParams(
            dimension_semantics=("parallel",)),
    )(
        embed_t, msa_t,
        params["w0"].astype(cd), params["b0"],
        params["w1"].astype(cd), params["b1"],
        w2e, w2m, params["b2"],
        params["w3"].astype(cd), params["b3"],
        params["w4"].astype(cd), params["b4"],
        params["w5"].reshape(1, H4),        # [1, 16] row for the VPU head (f32)
        params["b5"],
    )
    return out_padded[:, :1]


def _reference_forward(embed, msa, p):
    """Pure-JAX reference of the same forward pass (dropout = identity)."""
    o1 = jnp.maximum(embed @ p["w0"] + p["b0"], 0.0)          # [B, W, E]
    o2 = jnp.maximum(msa @ p["w1"] + p["b1"], 0.0)            # [B, W, M]
    x = jnp.concatenate([o2, o1], axis=-1)                    # [B, W, M+E]
    x = x.reshape(x.shape[0], -1)                             # [B, W*(M+E)]
    h = jnp.maximum(x @ p["w2"] + p["b2"], 0.0)
    h = jnp.maximum(h @ p["w3"] + p["b3"], 0.0)
    h = jnp.maximum(h @ p["w4"] + p["b4"], 0.0)
    return jax.nn.sigmoid(h @ p["w5"] + p["b5"])              # [B, 1]


def _init_params(key, W, E, M):
    H2, H3, H4 = 256, 128, 16
    ks = jax.random.split(key, 12)
    s = 0.1
    return {
        "w0": s * jax.random.normal(ks[0], (E, E), jnp.float32),
        "b0": s * jax.random.normal(ks[1], (1, E), jnp.float32),
        "w1": s * jax.random.normal(ks[2], (M, M), jnp.float32),
        "b1": s * jax.random.normal(ks[3], (1, M), jnp.float32),
        "w2": s * jax.random.normal(ks[4], ((E + M) * W, H2), jnp.float32),
        "b2": s * jax.random.normal(ks[5], (1, H2), jnp.float32),
        "w3": s * jax.random.normal(ks[6], (H2, H3), jnp.float32),
        "b3": s * jax.random.normal(ks[7], (1, H3), jnp.float32),
        "w4": s * jax.random.normal(ks[8], (H3, H4), jnp.float32),
        "b4": s * jax.random.normal(ks[9], (1, H4), jnp.float32),
        "w5": s * jax.random.normal(ks[10], (H4, 1), jnp.float32),
        "b5": s * jax.random.normal(ks[11], (1, 1), jnp.float32),
    }


if __name__ == "__main__":
    half_window = 3
    W = 2 * half_window + 1        # 7 window positions
    E, M = 32, 16                  # embedding_size, msa_size
    B = 16                         # batch

    key = jax.random.PRNGKey(0)
    k_e, k_m, k_p = jax.random.split(key, 3)
    embed = jax.random.normal(k_e, (B, W, E), jnp.float32)
    msa_embed = jax.random.normal(k_m, (B, W, M), jnp.float32)
    params = _init_params(k_p, W, E, M)

    ref = _reference_forward(embed, msa_embed, params)

    # f32 MXU operands: must match the reference tightly.
    out = mlp_module_forward(embed, msa_embed, params)
    out = jax.block_until_ready(out)
    assert out.shape == (B, 1)
    assert bool(jnp.all(jnp.isfinite(out)))
    err = float(jnp.max(jnp.abs(out - ref)))
    assert bool(jnp.allclose(out, ref, rtol=1e-3, atol=1e-3)), f"f32 max abs err {err}"

    # bf16 MXU operands (fast path on v5e/v6e/v7x), f32 accumulation.
    out_bf16 = mlp_module_forward(embed, msa_embed, params,
                                  compute_dtype=jnp.bfloat16)
    out_bf16 = jax.block_until_ready(out_bf16)
    assert out_bf16.shape == (B, 1)
    assert bool(jnp.all(jnp.isfinite(out_bf16)))
    err_bf16 = float(jnp.max(jnp.abs(out_bf16 - ref)))
    assert err_bf16 < 5e-2, f"bf16 max abs err {err_bf16}"

    print("KERNEL_OK")
</pallas_src>

<mosaic_0001>
module attributes {stable_mosaic.version = 11 : i64} {
  func.func @_mlp_kernel(%arg0: i32, %arg1: memref<7x16x32xf32, #tpu.memory_space<vmem>>, %arg2: memref<7x16x16xf32, #tpu.memory_space<vmem>>, %arg3: memref<32x32xf32, #tpu.memory_space<vmem>>, %arg4: memref<1x32xf32, #tpu.memory_space<vmem>>, %arg5: memref<16x16xf32, #tpu.memory_space<vmem>>, %arg6: memref<1x16xf32, #tpu.memory_space<vmem>>, %arg7: memref<7x32x256xf32, #tpu.memory_space<vmem>>, %arg8: memref<7x16x256xf32, #tpu.memory_space<vmem>>, %arg9: memref<1x256xf32, #tpu.memory_space<vmem>>, %arg10: memref<256x128xf32, #tpu.memory_space<vmem>>, %arg11: memref<1x128xf32, #tpu.memory_space<vmem>>, %arg12: memref<128x16xf32, #tpu.memory_space<vmem>>, %arg13: memref<1x16xf32, #tpu.memory_space<vmem>>, %arg14: memref<1x16xf32, #tpu.memory_space<vmem>>, %arg15: memref<1x1xf32, #tpu.memory_space<smem>>, %arg16: memref<16x128xf32, #tpu.memory_space<vmem>>, %arg17: memref<16x256xf32, #tpu.memory_space<vmem>>) attributes {dimension_semantics = [#tpu.dimension_semantics<parallel>], iteration_bounds = array<i64: 1>, scalar_prefetch = 0 : i64, scratch_operands = 1 : i64, tpu.core_type = #tpu.core_type<tc>, window_params = [{transform_indices = @transform_0, window_bounds = array<i64: 7, 16, 32>}, {transform_indices = @transform_1, window_bounds = array<i64: 7, 16, 16>}, {pipeline_mode = #tpu.pipeline_mode<synchronous>, transform_indices = @transform_2, window_bounds = array<i64: 32, 32>}, {pipeline_mode = #tpu.pipeline_mode<synchronous>, transform_indices = @transform_3, window_bounds = array<i64: 1, 32>}, {pipeline_mode = #tpu.pipeline_mode<synchronous>, transform_indices = @transform_4, window_bounds = array<i64: 16, 16>}, {pipeline_mode = #tpu.pipeline_mode<synchronous>, transform_indices = @transform_5, window_bounds = array<i64: 1, 16>}, {pipeline_mode = #tpu.pipeline_mode<synchronous>, transform_indices = @transform_6, window_bounds = array<i64: 7, 32, 256>}, {pipeline_mode = #tpu.pipeline_mode<synchronous>, transform_indices = @transform_7, window_bounds = array<i64: 7, 16, 256>}, {pipeline_mode = #tpu.pipeline_mode<synchronous>, transform_indices = @transform_8, window_bounds = array<i64: 1, 256>}, {pipeline_mode = #tpu.pipeline_mode<synchronous>, transform_indices = @transform_9, window_bounds = array<i64: 256, 128>}, {pipeline_mode = #tpu.pipeline_mode<synchronous>, transform_indices = @transform_10, window_bounds = array<i64: 1, 128>}, {pipeline_mode = #tpu.pipeline_mode<synchronous>, transform_indices = @transform_11, window_bounds = array<i64: 128, 16>}, {pipeline_mode = #tpu.pipeline_mode<synchronous>, transform_indices = @transform_12, window_bounds = array<i64: 1, 16>}, {pipeline_mode = #tpu.pipeline_mode<synchronous>, transform_indices = @transform_13, window_bounds = array<i64: 1, 16>}, {transform_indices = @transform_14, window_bounds = array<i64: 1, 1>}, {transform_indices = @transform_15, window_bounds = array<i64: 16, 128>}]} {
    %c0 = arith.constant 0 : index
    %c0_0 = arith.constant 0 : index
    %c0_1 = arith.constant 0 : index
    %0 = vector.load %arg1[%c0, %c0_0, %c0_1] : memref<7x16x32xf32, #tpu.memory_space<vmem>>, vector<7x16x32xf32>
    %c0_2 = arith.constant 0 : index
    %c0_3 = arith.constant 0 : index
    %c0_4 = arith.constant 0 : index
    %1 = vector.load %arg2[%c0_2, %c0_3, %c0_4] : memref<7x16x16xf32, #tpu.memory_space<vmem>>, vector<7x16x16xf32>
    %2 = vector.shape_cast %0 : vector<7x16x32xf32> to vector<112x32xf32>
    %3 = vector.shape_cast %1 : vector<7x16x16xf32> to vector<112x16xf32>
    %c0_5 = arith.constant 0 : index
    %c0_6 = arith.constant 0 : index
    %4 = vector.load %arg3[%c0_5, %c0_6] : memref<32x32xf32, #tpu.memory_space<vmem>>, vector<32x32xf32>
    %cst = arith.constant dense<0.000000e+00> : vector<112x32xf32>
    %5 = tpu.matmul %2, %4, %cst {dimension_numbers = #tpu.dot_dimension_numbers<[1], [0], [0], [1], [0, 0, 1, 1], [], []>} : vector<112x32xf32>, vector<32x32xf32>, vector<112x32xf32> -> vector<112x32xf32>
    %c0_7 = arith.constant 0 : index
    %c0_8 = arith.constant 0 : index
    %6 = vector.load %arg4[%c0_7, %c0_8] : memref<1x32xf32, #tpu.memory_space<vmem>>, vector<1x32xf32>
    %7 = vector.broadcast %6 : vector<1x32xf32> to vector<112x32xf32>
    %8 = arith.addf %5, %7 : vector<112x32xf32>
    %cst_9 = arith.constant 0.000000e+00 : f32
    %9 = vector.broadcast %cst_9 : f32 to vector<112x32xf32>
    %10 = arith.maximumf %8, %9 : vector<112x32xf32>
    %c0_10 = arith.constant 0 : index
    %c0_11 = arith.constant 0 : index
    %11 = vector.load %arg5[%c0_10, %c0_11] : memref<16x16xf32, #tpu.memory_space<vmem>>, vector<16x16xf32>
    %cst_12 = arith.constant dense<0.000000e+00> : vector<112x16xf32>
    %12 = tpu.matmul %3, %11, %cst_12 {dimension_numbers = #tpu.dot_dimension_numbers<[1], [0], [0], [1], [0, 0, 1, 1], [], []>} : vector<112x16xf32>, vector<16x16xf32>, vector<112x16xf32> -> vector<112x16xf32>
    %c0_13 = arith.constant 0 : index
    %c0_14 = arith.constant 0 : index
    %13 = vector.load %arg6[%c0_13, %c0_14] : memref<1x16xf32, #tpu.memory_space<vmem>>, vector<1x16xf32>
    %14 = vector.broadcast %13 : vector<1x16xf32> to vector<112x16xf32>
    %15 = arith.addf %12, %14 : vector<112x16xf32>
    %cst_15 = arith.constant 0.000000e+00 : f32
    %16 = vector.broadcast %cst_15 : f32 to vector<112x16xf32>
    %17 = arith.maximumf %15, %16 : vector<112x16xf32>
    %c0_16 = arith.constant 0 : index
    %c0_17 = arith.constant 0 : index
    %18 = vector.load %arg9[%c0_16, %c0_17] : memref<1x256xf32, #tpu.memory_space<vmem>>, vector<1x256xf32>
    %19 = vector.shape_cast %18 : vector<1x256xf32> to vector<1x256xf32>
    %20 = vector.broadcast %19 : vector<1x256xf32> to vector<16x256xf32>
    %c0_18 = arith.constant 0 : index
    %c0_19 = arith.constant 0 : index
    %21 = vector.load %arg17[%c0_18, %c0_19] : memref<16x256xf32, #tpu.memory_space<vmem>>, vector<16x256xf32>
    tpu.vector_store %arg17[%c0_18, %c0_19], %20 {strides = array<i32>} : memref<16x256xf32, #tpu.memory_space<vmem>>, vector<16x256xf32>,
    %c0_20 = arith.constant 0 : index
    %c0_21 = arith.constant 0 : index
    %22 = vector.load %arg17[%c0_20, %c0_21] : memref<16x256xf32, #tpu.memory_space<vmem>>, vector<16x256xf32>
    %23 = vector.extract_strided_slice %17 {offsets = [0, 0], sizes = [16, 16], strides = [1, 1]} : vector<112x16xf32> to vector<16x16xf32>
    %c0_22 = arith.constant 0 : index
    %c0_23 = arith.constant 0 : index
    %c0_24 = arith.constant 0 : index
    %24 = vector.load %arg8[%c0_22, %c0_23, %c0_24] : memref<7x16x256xf32, #tpu.memory_space<vmem>>, vector<1x16x256xf32>
    %25 = vector.shape_cast %24 : vector<1x16x256xf32> to vector<16x256xf32>
    %cst_25 = arith.constant dense<0.000000e+00> : vector<16x256xf32>
    %26 = tpu.matmul %23, %25, %cst_25 {dimension_numbers = #tpu.dot_dimension_numbers<[1], [0], [0], [1], [0, 0, 1, 1], [], []>} : vector<16x16xf32>, vector<16x256xf32>, vector<16x256xf32> -> vector<16x256xf32>
    %27 = arith.addf %22, %26 : vector<16x256xf32>
    %c0_26 = arith.constant 0 : index
    %c0_27 = arith.constant 0 : index
    %28 = vector.load %arg17[%c0_26, %c0_27] : memref<16x256xf32, #tpu.memory_space<vmem>>, vector<16x256xf32>
    tpu.vector_store %arg17[%c0_26, %c0_27], %27 {strides = array<i32>} : memref<16x256xf32, #tpu.memory_space<vmem>>, vector<16x256xf32>,
    %c0_28 = arith.constant 0 : index
    %c0_29 = arith.constant 0 : index
    %29 = vector.load %arg17[%c0_28, %c0_29] : memref<16x256xf32, #tpu.memory_space<vmem>>, vector<16x256xf32>
    %30 = vector.extract_strided_slice %10 {offsets = [0, 0], sizes = [16, 32], strides = [1, 1]} : vector<112x32xf32> to vector<16x32xf32>
    %c0_30 = arith.constant 0 : index
    %c0_31 = arith.constant 0 : index
    %c0_32 = arith.constant 0 : index
    %31 = vector.load %arg7[%c0_30, %c0_31, %c0_32] : memref<7x32x256xf32, #tpu.memory_space<vmem>>, vector<1x32x256xf32>
    %32 = vector.shape_cast %31 : vector<1x32x256xf32> to vector<32x256xf32>
    %cst_33 = arith.constant dense<0.000000e+00> : vector<16x256xf32>
    %33 = tpu.matmul %30, %32, %cst_33 {dimension_numbers = #tpu.dot_dimension_numbers<[1], [0], [0], [1], [0, 0, 1, 1], [], []>} : vector<16x32xf32>, vector<32x256xf32>, vector<16x256xf32> -> vector<16x256xf32>
    %34 = arith.addf %29, %33 : vector<16x256xf32>
    %c0_34 = arith.constant 0 : index
    %c0_35 = arith.constant 0 : index
    %35 = vector.load %arg17[%c0_34, %c0_35] : memref<16x256xf32, #tpu.memory_space<vmem>>, vector<16x256xf32>
    tpu.vector_store %arg17[%c0_34, %c0_35], %34 {strides = array<i32>} : memref<16x256xf32, #tpu.memory_space<vmem>>, vector<16x256xf32>,
    %c0_36 = arith.constant 0 : index
    %c0_37 = arith.constant 0 : index
    %36 = vector.load %arg17[%c0_36, %c0_37] : memref<16x256xf32, #tpu.memory_space<vmem>>, vector<16x256xf32>
    %37 = vector.extract_strided_slice %17 {offsets = [16, 0], sizes = [16, 16], strides = [1, 1]} : vector<112x16xf32> to vector<16x16xf32>
    %c1 = arith.constant 1 : index
    %c0_38 = arith.constant 0 : index
    %c0_39 = arith.constant 0 : index
    %38 = vector.load %arg8[%c1, %c0_38, %c0_39] : memref<7x16x256xf32, #tpu.memory_space<vmem>>, vector<1x16x256xf32>
    %39 = vector.shape_cast %38 : vector<1x16x256xf32> to vector<16x256xf32>
    %cst_40 = arith.constant dense<0.000000e+00> : vector<16x256xf32>
    %40 = tpu.matmul %37, %39, %cst_40 {dimension_numbers = #tpu.dot_dimension_numbers<[1], [0], [0], [1], [0, 0, 1, 1], [], []>} : vector<16x16xf32>, vector<16x256xf32>, vector<16x256xf32> -> vector<16x256xf32>
    %41 = arith.addf %36, %40 : vector<16x256xf32>
    %c0_41 = arith.constant 0 : index
    %c0_42 = arith.constant 0 : index
    %42 = vector.load %arg17[%c0_41, %c0_42] : memref<16x256xf32, #tpu.memory_space<vmem>>, vector<16x256xf32>
    tpu.vector_store %arg17[%c0_41, %c0_42], %41 {strides = array<i32>} : memref<16x256xf32, #tpu.memory_space<vmem>>, vector<16x256xf32>,
    %c0_43 = arith.constant 0 : index
    %c0_44 = arith.constant 0 : index
    %43 = vector.load %arg17[%c0_43, %c0_44] : memref<16x256xf32, #tpu.memory_space<vmem>>, vector<16x256xf32>
    %44 = vector.extract_strided_slice %10 {offsets = [16, 0], sizes = [16, 32], strides = [1, 1]} : vector<112x32xf32> to vector<16x32xf32>
    %c1_45 = arith.constant 1 : index
    %c0_46 = arith.constant 0 : index
    %c0_47 = arith.constant 0 : index
    %45 = vector.load %arg7[%c1_45, %c0_46, %c0_47] : memref<7x32x256xf32, #tpu.memory_space<vmem>>, vector<1x32x256xf32>
    %46 = vector.shape_cast %45 : vector<1x32x256xf32> to vector<32x256xf32>
    %cst_48 = arith.constant dense<0.000000e+00> : vector<16x256xf32>
    %47 = tpu.matmul %44, %46, %cst_48 {dimension_numbers = #tpu.dot_dimension_numbers<[1], [0], [0], [1], [0, 0, 1, 1], [], []>} : vector<16x32xf32>, vector<32x256xf32>, vector<16x256xf32> -> vector<16x256xf32>
    %48 = arith.addf %43, %47 : vector<16x256xf32>
    %c0_49 = arith.constant 0 : index
    %c0_50 = arith.constant 0 : index
    %49 = vector.load %arg17[%c0_49, %c0_50] : memref<16x256xf32, #tpu.memory_space<vmem>>, vector<16x256xf32>
    tpu.vector_store %arg17[%c0_49, %c0_50], %48 {strides = array<i32>} : memref<16x256xf32, #tpu.memory_space<vmem>>, vector<16x256xf32>,
    %c0_51 = arith.constant 0 : index
    %c0_52 = arith.constant 0 : index
    %50 = vector.load %arg17[%c0_51, %c0_52] : memref<16x256xf32, #tpu.memory_space<vmem>>, vector<16x256xf32>
    %51 = vector.extract_strided_slice %17 {offsets = [32, 0], sizes = [16, 16], strides = [1, 1]} : vector<112x16xf32> to vector<16x16xf32>
    %c2 = arith.constant 2 : index
    %c0_53 = arith.constant 0 : index
    %c0_54 = arith.constant 0 : index
    %52 = vector.load %arg8[%c2, %c0_53, %c0_54] : memref<7x16x256xf32, #tpu.memory_space<vmem>>, vector<1x16x256xf32>
    %53 = vector.shape_cast %52 : vector<1x16x256xf32> to vector<16x256xf32>
    %cst_55 = arith.constant dense<0.000000e+00> : vector<16x256xf32>
    %54 = tpu.matmul %51, %53, %cst_55 {dimension_numbers = #tpu.dot_dimension_numbers<[1], [0], [0], [1], [0, 0, 1, 1], [], []>} : vector<16x16xf32>, vector<16x256xf32>, vector<16x256xf32> -> vector<16x256xf32>
    %55 = arith.addf %50, %54 : vector<16x256xf32>
    %c0_56 = arith.constant 0 : index
    %c0_57 = arith.constant 0 : index
    %56 = vector.load %arg17[%c0_56, %c0_57] : memref<16x256xf32, #tpu.memory_space<vmem>>, vector<16x256xf32>
    tpu.vector_store %arg17[%c0_56, %c0_57], %55 {strides = array<i32>} : memref<16x256xf32, #tpu.memory_space<vmem>>, vector<16x256xf32>,
    %c0_58 = arith.constant 0 : index
    %c0_59 = arith.constant 0 : index
    %57 = vector.load %arg17[%c0_58, %c0_59] : memref<16x256xf32, #tpu.memory_space<vmem>>, vector<16x256xf32>
    %58 = vector.extract_strided_slice %10 {offsets = [32, 0], sizes = [16, 32], strides = [1, 1]} : vector<112x32xf32> to vector<16x32xf32>
    %c2_60 = arith.constant 2 : index
    %c0_61 = arith.constant 0 : index
    %c0_62 = arith.constant 0 : index
    %59 = vector.load %arg7[%c2_60, %c0_61, %c0_62] : memref<7x32x256xf32, #tpu.memory_space<vmem>>, vector<1x32x256xf32>
    %60 = vector.shape_cast %59 : vector<1x32x256xf32> to vector<32x256xf32>
    %cst_63 = arith.constant dense<0.000000e+00> : vector<16x256xf32>
    %61 = tpu.matmul %58, %60, %cst_63 {dimension_numbers = #tpu.dot_dimension_numbers<[1], [0], [0], [1], [0, 0, 1, 1], [], []>} : vector<16x32xf32>, vector<32x256xf32>, vector<16x256xf32> -> vector<16x256xf32>
    %62 = arith.addf %57, %61 : vector<16x256xf32>
    %c0_64 = arith.constant 0 : index
    %c0_65 = arith.constant 0 : index
    %63 = vector.load %arg17[%c0_64, %c0_65] : memref<16x256xf32, #tpu.memory_space<vmem>>, vector<16x256xf32>
    tpu.vector_store %arg17[%c0_64, %c0_65], %62 {strides = array<i32>} : memref<16x256xf32, #tpu.memory_space<vmem>>, vector<16x256xf32>,
    %c0_66 = arith.constant 0 : index
    %c0_67 = arith.constant 0 : index
    %64 = vector.load %arg17[%c0_66, %c0_67] : memref<16x256xf32, #tpu.memory_space<vmem>>, vector<16x256xf32>
    %65 = vector.extract_strided_slice %17 {offsets = [48, 0], sizes = [16, 16], strides = [1, 1]} : vector<112x16xf32> to vector<16x16xf32>
    %c3 = arith.constant 3 : index
    %c0_68 = arith.constant 0 : index
    %c0_69 = arith.constant 0 : index
    %66 = vector.load %arg8[%c3, %c0_68, %c0_69] : memref<7x16x256xf32, #tpu.memory_space<vmem>>, vector<1x16x256xf32>
    %67 = vector.shape_cast %66 : vector<1x16x256xf32> to vector<16x256xf32>
    %cst_70 = arith.constant dense<0.000000e+00> : vector<16x256xf32>
    %68 = tpu.matmul %65, %67, %cst_70 {dimension_numbers = #tpu.dot_dimension_numbers<[1], [0], [0], [1], [0, 0, 1, 1], [], []>} : vector<16x16xf32>, vector<16x256xf32>, vector<16x256xf32> -> vector<16x256xf32>
    %69 = arith.addf %64, %68 : vector<16x256xf32>
    %c0_71 = arith.constant 0 : index
    %c0_72 = arith.constant 0 : index
    %70 = vector.load %arg17[%c0_71, %c0_72] : memref<16x256xf32, #tpu.memory_space<vmem>>, vector<16x256xf32>
    tpu.vector_store %arg17[%c0_71, %c0_72], %69 {strides = array<i32>} : memref<16x256xf32, #tpu.memory_space<vmem>>, vector<16x256xf32>,
    %c0_73 = arith.constant 0 : index
    %c0_74 = arith.constant 0 : index
    %71 = vector.load %arg17[%c0_73, %c0_74] : memref<16x256xf32, #tpu.memory_space<vmem>>, vector<16x256xf32>
    %72 = vector.extract_strided_slice %10 {offsets = [48, 0], sizes = [16, 32], strides = [1, 1]} : vector<112x32xf32> to vector<16x32xf32>
    %c3_75 = arith.constant 3 : index
    %c0_76 = arith.constant 0 : index
    %c0_77 = arith.constant 0 : index
    %73 = vector.load %arg7[%c3_75, %c0_76, %c0_77] : memref<7x32x256xf32, #tpu.memory_space<vmem>>, vector<1x32x256xf32>
    %74 = vector.shape_cast %73 : vector<1x32x256xf32> to vector<32x256xf32>
    %cst_78 = arith.constant dense<0.000000e+00> : vector<16x256xf32>
    %75 = tpu.matmul %72, %74, %cst_78 {dimension_numbers = #tpu.dot_dimension_numbers<[1], [0], [0], [1], [0, 0, 1, 1], [], []>} : vector<16x32xf32>, vector<32x256xf32>, vector<16x256xf32> -> vector<16x256xf32>
    %76 = arith.addf %71, %75 : vector<16x256xf32>
    %c0_79 = arith.constant 0 : index
    %c0_80 = arith.constant 0 : index
    %77 = vector.load %arg17[%c0_79, %c0_80] : memref<16x256xf32, #tpu.memory_space<vmem>>, vector<16x256xf32>
    tpu.vector_store %arg17[%c0_79, %c0_80], %76 {strides = array<i32>} : memref<16x256xf32, #tpu.memory_space<vmem>>, vector<16x256xf32>,
    %c0_81 = arith.constant 0 : index
    %c0_82 = arith.constant 0 : index
    %78 = vector.load %arg17[%c0_81, %c0_82] : memref<16x256xf32, #tpu.memory_space<vmem>>, vector<16x256xf32>
    %79 = vector.extract_strided_slice %17 {offsets = [64, 0], sizes = [16, 16], strides = [1, 1]} : vector<112x16xf32> to vector<16x16xf32>
    %c4 = arith.constant 4 : index
    %c0_83 = arith.constant 0 : index
    %c0_84 = arith.constant 0 : index
    %80 = vector.load %arg8[%c4, %c0_83, %c0_84] : memref<7x16x256xf32, #tpu.memory_space<vmem>>, vector<1x16x256xf32>
    %81 = vector.shape_cast %80 : vector<1x16x256xf32> to vector<16x256xf32>
    %cst_85 = arith.constant dense<0.000000e+00> : vector<16x256xf32>
    %82 = tpu.matmul %79, %81, %cst_85 {dimension_numbers = #tpu.dot_dimension_numbers<[1], [0], [0], [1], [0, 0, 1, 1], [], []>} : vector<16x16xf32>, vector<16x256xf32>, vector<16x256xf32> -> vector<16x256xf32>
    %83 = arith.addf %78, %82 : vector<16x256xf32>
    %c0_86 = arith.constant 0 : index
    %c0_87 = arith.constant 0 : index
    %84 = vector.load %arg17[%c0_86, %c0_87] : memref<16x256xf32, #tpu.memory_space<vmem>>, vector<16x256xf32>
    tpu.vector_store %arg17[%c0_86, %c0_87], %83 {strides = array<i32>} : memref<16x256xf32, #tpu.memory_space<vmem>>, vector<16x256xf32>,
    %c0_88 = arith.constant 0 : index
    %c0_89 = arith.constant 0 : index
    %85 = vector.load %arg17[%c0_88, %c0_89] : memref<16x256xf32, #tpu.memory_space<vmem>>, vector<16x256xf32>
    %86 = vector.extract_strided_slice %10 {offsets = [64, 0], sizes = [16, 32], strides = [1, 1]} : vector<112x32xf32> to vector<16x32xf32>
    %c4_90 = arith.constant 4 : index
    %c0_91 = arith.constant 0 : index
    %c0_92 = arith.constant 0 : index
    %87 = vector.load %arg7[%c4_90, %c0_91, %c0_92] : memref<7x32x256xf32, #tpu.memory_space<vmem>>, vector<1x32x256xf32>
    %88 = vector.shape_cast %87 : vector<1x32x256xf32> to vector<32x256xf32>
    %cst_93 = arith.constant dense<0.000000e+00> : vector<16x256xf32>
    %89 = tpu.matmul %86, %88, %cst_93 {dimension_numbers = #tpu.dot_dimension_numbers<[1], [0], [0], [1], [0, 0, 1, 1], [], []>} : vector<16x32xf32>, vector<32x256xf32>, vector<16x256xf32> -> vector<16x256xf32>
    %90 = arith.addf %85, %89 : vector<16x256xf32>
    %c0_94 = arith.constant 0 : index
    %c0_95 = arith.constant 0 : index
    %91 = vector.load %arg17[%c0_94, %c0_95] : memref<16x256xf32, #tpu.memory_space<vmem>>, vector<16x256xf32>
    tpu.vector_store %arg17[%c0_94, %c0_95], %90 {strides = array<i32>} : memref<16x256xf32, #tpu.memory_space<vmem>>, vector<16x256xf32>,
    %c0_96 = arith.constant 0 : index
    %c0_97 = arith.constant 0 : index
    %92 = vector.load %arg17[%c0_96, %c0_97] : memref<16x256xf32, #tpu.memory_space<vmem>>, vector<16x256xf32>
    %93 = vector.extract_strided_slice %17 {offsets = [80, 0], sizes = [16, 16], strides = [1, 1]} : vector<112x16xf32> to vector<16x16xf32>
    %c5 = arith.constant 5 : index
    %c0_98 = arith.constant 0 : index
    %c0_99 = arith.constant 0 : index
    %94 = vector.load %arg8[%c5, %c0_98, %c0_99] : memref<7x16x256xf32, #tpu.memory_space<vmem>>, vector<1x16x256xf32>
    %95 = vector.shape_cast %94 : vector<1x16x256xf32> to vector<16x256xf32>
    %cst_100 = arith.constant dense<0.000000e+00> : vector<16x256xf32>
    %96 = tpu.matmul %93, %95, %cst_100 {dimension_numbers = #tpu.dot_dimension_numbers<[1], [0], [0], [1], [0, 0, 1, 1], [], []>} : vector<16x16xf32>, vector<16x256xf32>, vector<16x256xf32> -> vector<16x256xf32>
    %97 = arith.addf %92, %96 : vector<16x256xf32>
    %c0_101 = arith.constant 0 : index
    %c0_102 = arith.constant 0 : index
    %98 = vector.load %arg17[%c0_101, %c0_102] : memref<16x256xf32, #tpu.memory_space<vmem>>, vector<16x256xf32>
    tpu.vector_store %arg17[%c0_101, %c0_102], %97 {strides = array<i32>} : memref<16x256xf32, #tpu.memory_space<vmem>>, vector<16x256xf32>,
    %c0_103 = arith.constant 0 : index
    %c0_104 = arith.constant 0 : index
    %99 = vector.load %arg17[%c0_103, %c0_104] : memref<16x256xf32, #tpu.memory_space<vmem>>, vector<16x256xf32>
    %100 = vector.extract_strided_slice %10 {offsets = [80, 0], sizes = [16, 32], strides = [1, 1]} : vector<112x32xf32> to vector<16x32xf32>
    %c5_105 = arith.constant 5 : index
    %c0_106 = arith.constant 0 : index
    %c0_107 = arith.constant 0 : index
    %101 = vector.load %arg7[%c5_105, %c0_106, %c0_107] : memref<7x32x256xf32, #tpu.memory_space<vmem>>, vector<1x32x256xf32>
    %102 = vector.shape_cast %101 : vector<1x32x256xf32> to vector<32x256xf32>
    %cst_108 = arith.constant dense<0.000000e+00> : vector<16x256xf32>
    %103 = tpu.matmul %100, %102, %cst_108 {dimension_numbers = #tpu.dot_dimension_numbers<[1], [0], [0], [1], [0, 0, 1, 1], [], []>} : vector<16x32xf32>, vector<32x256xf32>, vector<16x256xf32> -> vector<16x256xf32>
    %104 = arith.addf %99, %103 : vector<16x256xf32>
    %c0_109 = arith.constant 0 : index
    %c0_110 = arith.constant 0 : index
    %105 = vector.load %arg17[%c0_109, %c0_110] : memref<16x256xf32, #tpu.memory_space<vmem>>, vector<16x256xf32>
    tpu.vector_store %arg17[%c0_109, %c0_110], %104 {strides = array<i32>} : memref<16x256xf32, #tpu.memory_space<vmem>>, vector<16x256xf32>,
    %c0_111 = arith.constant 0 : index
    %c0_112 = arith.constant 0 : index
    %106 = vector.load %arg17[%c0_111, %c0_112] : memref<16x256xf32, #tpu.memory_space<vmem>>, vector<16x256xf32>
    %107 = vector.extract_strided_slice %17 {offsets = [96, 0], sizes = [16, 16], strides = [1, 1]} : vector<112x16xf32> to vector<16x16xf32>
    %c6 = arith.constant 6 : index
    %c0_113 = arith.constant 0 : index
    %c0_114 = arith.constant 0 : index
    %108 = vector.load %arg8[%c6, %c0_113, %c0_114] : memref<7x16x256xf32, #tpu.memory_space<vmem>>, vector<1x16x256xf32>
    %109 = vector.shape_cast %108 : vector<1x16x256xf32> to vector<16x256xf32>
    %cst_115 = arith.constant dense<0.000000e+00> : vector<16x256xf32>
    %110 = tpu.matmul %107, %109, %cst_115 {dimension_numbers = #tpu.dot_dimension_numbers<[1], [0], [0], [1], [0, 0, 1, 1], [], []>} : vector<16x16xf32>, vector<16x256xf32>, vector<16x256xf32> -> vector<16x256xf32>
    %111 = arith.addf %106, %110 : vector<16x256xf32>
    %c0_116 = arith.constant 0 : index
    %c0_117 = arith.constant 0 : index
    %112 = vector.load %arg17[%c0_116, %c0_117] : memref<16x256xf32, #tpu.memory_space<vmem>>, vector<16x256xf32>
    tpu.vector_store %arg17[%c0_116, %c0_117], %111 {strides = array<i32>} : memref<16x256xf32, #tpu.memory_space<vmem>>, vector<16x256xf32>,
    %c0_118 = arith.constant 0 : index
    %c0_119 = arith.constant 0 : index
    %113 = vector.load %arg17[%c0_118, %c0_119] : memref<16x256xf32, #tpu.memory_space<vmem>>, vector<16x256xf32>
    %114 = vector.extract_strided_slice %10 {offsets = [96, 0], sizes = [16, 32], strides = [1, 1]} : vector<112x32xf32> to vector<16x32xf32>
    %c6_120 = arith.constant 6 : index
    %c0_121 = arith.constant 0 : index
    %c0_122 = arith.constant 0 : index
    %115 = vector.load %arg7[%c6_120, %c0_121, %c0_122] : memref<7x32x256xf32, #tpu.memory_space<vmem>>, vector<1x32x256xf32>
    %116 = vector.shape_cast %115 : vector<1x32x256xf32> to vector<32x256xf32>
    %cst_123 = arith.constant dense<0.000000e+00> : vector<16x256xf32>
    %117 = tpu.matmul %114, %116, %cst_123 {dimension_numbers = #tpu.dot_dimension_numbers<[1], [0], [0], [1], [0, 0, 1, 1], [], []>} : vector<16x32xf32>, vector<32x256xf32>, vector<16x256xf32> -> vector<16x256xf32>
    %118 = arith.addf %113, %117 : vector<16x256xf32>
    %c0_124 = arith.constant 0 : index
    %c0_125 = arith.constant 0 : index
    %119 = vector.load %arg17[%c0_124, %c0_125] : memref<16x256xf32, #tpu.memory_space<vmem>>, vector<16x256xf32>
    tpu.vector_store %arg17[%c0_124, %c0_125], %118 {strides = array<i32>} : memref<16x256xf32, #tpu.memory_space<vmem>>, vector<16x256xf32>,
    %c0_126 = arith.constant 0 : index
    %c0_127 = arith.constant 0 : index
    %120 = vector.load %arg17[%c0_126, %c0_127] : memref<16x256xf32, #tpu.memory_space<vmem>>, vector<16x256xf32>
    %cst_128 = arith.constant 0.000000e+00 : f32
    %121 = vector.broadcast %cst_128 : f32 to vector<16x256xf32>
    %122 = arith.maximumf %120, %121 : vector<16x256xf32>
    %c0_129 = arith.constant 0 : index
    %c0_130 = arith.constant 0 : index
    %123 = vector.load %arg10[%c0_129, %c0_130] : memref<256x128xf32, #tpu.memory_space<vmem>>, vector<256x128xf32>
    %cst_131 = arith.constant dense<0.000000e+00> : vector<16x128xf32>
    %124 = tpu.matmul %122, %123, %cst_131 {dimension_numbers = #tpu.dot_dimension_numbers<[1], [0], [0], [1], [0, 0, 1, 1], [], []>} : vector<16x256xf32>, vector<256x128xf32>, vector<16x128xf32> -> vector<16x128xf32>
    %c0_132 = arith.constant 0 : index
    %c0_133 = arith.constant 0 : index
    %125 = vector.load %arg11[%c0_132, %c0_133] : memref<1x128xf32, #tpu.memory_space<vmem>>, vector<1x128xf32>
    %126 = vector.broadcast %125 : vector<1x128xf32> to vector<16x128xf32>
    %127 = arith.addf %124, %126 : vector<16x128xf32>
    %cst_134 = arith.constant 0.000000e+00 : f32
    %128 = vector.broadcast %cst_134 : f32 to vector<16x128xf32>
    %129 = arith.maximumf %127, %128 : vector<16x128xf32>
    %c0_135 = arith.constant 0 : index
    %c0_136 = arith.constant 0 : index
    %130 = vector.load %arg12[%c0_135, %c0_136] : memref<128x16xf32, #tpu.memory_space<vmem>>, vector<128x16xf32>
    %cst_137 = arith.constant dense<0.000000e+00> : vector<16x16xf32>
    %131 = tpu.matmul %129, %130, %cst_137 {dimension_numbers = #tpu.dot_dimension_numbers<[1], [0], [0], [1], [0, 0, 1, 1], [], []>} : vector<16x128xf32>, vector<128x16xf32>, vector<16x16xf32> -> vector<16x16xf32>
    %c0_138 = arith.constant 0 : index
    %c0_139 = arith.constant 0 : index
    %132 = vector.load %arg13[%c0_138, %c0_139] : memref<1x16xf32, #tpu.memory_space<vmem>>, vector<1x16xf32>
    %133 = vector.broadcast %132 : vector<1x16xf32> to vector<16x16xf32>
    %134 = arith.addf %131, %133 : vector<16x16xf32>
    %cst_140 = arith.constant 0.000000e+00 : f32
    %135 = vector.broadcast %cst_140 : f32 to vector<16x16xf32>
    %136 = arith.maximumf %134, %135 : vector<16x16xf32>
    %c0_141 = arith.constant 0 : index
    %c0_142 = arith.constant 0 : index
    %137 = vector.load %arg14[%c0_141, %c0_142] : memref<1x16xf32, #tpu.memory_space<vmem>>, vector<1x16xf32>
    %138 = vector.broadcast %137 : vector<1x16xf32> to vector<16x16xf32>
    %139 = arith.mulf %136, %138 : vector<16x16xf32>
    %cst_143 = arith.constant dense<0.000000e+00> : vector<16xf32>
    %140 = vector.multi_reduction <add>, %139, %cst_143 [1] : vector<16x16xf32> to vector<16xf32>
    %141 = vector.shape_cast %140 : vector<16xf32> to vector<16x1xf32>
    %c0_144 = arith.constant 0 : index
    %c0_145 = arith.constant 0 : index
    %142 = memref.load %arg15[%c0_144, %c0_145] : memref<1x1xf32, #tpu.memory_space<smem>>
    %143 = vector.broadcast %142 : f32 to vector<16x1xf32>
    %144 = arith.addf %141, %143 : vector<16x1xf32>
    %145 = arith.negf %144 : vector<16x1xf32>
    %146 = math.exp %145 : vector<16x1xf32>
    %cst_146 = arith.constant 1.000000e+00 : f32
    %147 = vector.broadcast %cst_146 : f32 to vector<16x1xf32>
    %148 = arith.addf %147, %146 : vector<16x1xf32>
    %149 = arith.divf %147, %148 : vector<16x1xf32>
    %150 = vector.shape_cast %149 : vector<16x1xf32> to vector<16x1xf32>
    %151 = vector.broadcast %150 : vector<16x1xf32> to vector<16x128xf32>
    %c0_147 = arith.constant 0 : index
    %c0_148 = arith.constant 0 : index
    %152 = vector.load %arg16[%c0_147, %c0_148] : memref<16x128xf32, #tpu.memory_space<vmem>>, vector<16x128xf32>
    tpu.vector_store %arg16[%c0_147, %c0_148], %151 {strides = array<i32>} : memref<16x128xf32, #tpu.memory_space<vmem>>, vector<16x128xf32>,
    return
  }
  func.func @transform_0(%arg0: i32) -> (i32, i32, i32) {
    %c0_i32 = arith.constant 0 : i32
    %c0_i32_0 = arith.constant 0 : i32
    %c0_i32_1 = arith.constant 0 : i32
    return %c0_i32, %arg0, %c0_i32_0 : i32, i32, i32
  }
  func.func @transform_1(%arg0: i32) -> (i32, i32, i32) {
    %c0_i32 = arith.constant 0 : i32
    %c0_i32_0 = arith.constant 0 : i32
    %c0_i32_1 = arith.constant 0 : i32
    return %c0_i32, %arg0, %c0_i32_0 : i32, i32, i32
  }
  func.func @transform_2(%arg0: i32) -> (i32, i32) {
    %c0_i32 = arith.constant 0 : i32
    %c0_i32_0 = arith.constant 0 : i32
    %c0_i32_1 = arith.constant 0 : i32
    return %c0_i32, %c0_i32_0 : i32, i32
  }
  func.func @transform_3(%arg0: i32) -> (i32, i32) {
    %c0_i32 = arith.constant 0 : i32
    %c0_i32_0 = arith.constant 0 : i32
    %c0_i32_1 = arith.constant 0 : i32
    return %c0_i32, %c0_i32_0 : i32, i32
  }
  func.func @transform_4(%arg0: i32) -> (i32, i32) {
    %c0_i32 = arith.constant 0 : i32
    %c0_i32_0 = arith.constant 0 : i32
    %c0_i32_1 = arith.constant 0 : i32
    return %c0_i32, %c0_i32_0 : i32, i32
  }
  func.func @transform_5(%arg0: i32) -> (i32, i32) {
    %c0_i32 = arith.constant 0 : i32
    %c0_i32_0 = arith.constant 0 : i32
    %c0_i32_1 = arith.constant 0 : i32
    return %c0_i32, %c0_i32_0 : i32, i32
  }
  func.func @transform_6(%arg0: i32) -> (i32, i32, i32) {
    %c0_i32 = arith.constant 0 : i32
    %c0_i32_0 = arith.constant 0 : i32
    %c0_i32_1 = arith.constant 0 : i32
    %c0_i32_2 = arith.constant 0 : i32
    return %c0_i32, %c0_i32_0, %c0_i32_1 : i32, i32, i32
  }
  func.func @transform_7(%arg0: i32) -> (i32, i32, i32) {
    %c0_i32 = arith.constant 0 : i32
    %c0_i32_0 = arith.constant 0 : i32
    %c0_i32_1 = arith.constant 0 : i32
    %c0_i32_2 = arith.constant 0 : i32
    return %c0_i32, %c0_i32_0, %c0_i32_1 : i32, i32, i32
  }
  func.func @transform_8(%arg0: i32) -> (i32, i32) {
    %c0_i32 = arith.constant 0 : i32
    %c0_i32_0 = arith.constant 0 : i32
    %c0_i32_1 = arith.constant 0 : i32
    return %c0_i32, %c0_i32_0 : i32, i32
  }
  func.func @transform_9(%arg0: i32) -> (i32, i32) {
    %c0_i32 = arith.constant 0 : i32
    %c0_i32_0 = arith.constant 0 : i32
    %c0_i32_1 = arith.constant 0 : i32
    return %c0_i32, %c0_i32_0 : i32, i32
  }
  func.func @transform_10(%arg0: i32) -> (i32, i32) {
    %c0_i32 = arith.constant 0 : i32
    %c0_i32_0 = arith.constant 0 : i32
    %c0_i32_1 = arith.constant 0 : i32
    return %c0_i32, %c0_i32_0 : i32, i32
  }
  func.func @transform_11(%arg0: i32) -> (i32, i32) {
    %c0_i32 = arith.constant 0 : i32
    %c0_i32_0 = arith.constant 0 : i32
    %c0_i32_1 = arith.constant 0 : i32
    return %c0_i32, %c0_i32_0 : i32, i32
  }
  func.func @transform_12(%arg0: i32) -> (i32, i32) {
    %c0_i32 = arith.constant 0 : i32
    %c0_i32_0 = arith.constant 0 : i32
    %c0_i32_1 = arith.constant 0 : i32
    return %c0_i32, %c0_i32_0 : i32, i32
  }
  func.func @transform_13(%arg0: i32) -> (i32, i32) {
    %c0_i32 = arith.constant 0 : i32
    %c0_i32_0 = arith.constant 0 : i32
    %c0_i32_1 = arith.constant 0 : i32
    return %c0_i32, %c0_i32_0 : i32, i32
  }
  func.func @transform_14(%arg0: i32) -> (i32, i32) {
    %c0_i32 = arith.constant 0 : i32
    %c0_i32_0 = arith.constant 0 : i32
    %c0_i32_1 = arith.constant 0 : i32
    return %c0_i32, %c0_i32_0 : i32, i32
  }
  func.func @transform_15(%arg0: i32) -> (i32, i32) {
    %c0_i32 = arith.constant 0 : i32
    %c0_i32_0 = arith.constant 0 : i32
    return %arg0, %c0_i32 : i32, i32
  }
}

</mosaic_0001>

<bundles_post_ra>
// kernel: tpu_custom_call.1
= control target key start
LH: loop header
LB: loop body
LE: loop exit
PB: predicated region body
PF: predicated region fallthrough
CT: control target
= control target key end

     0   :  { %21 = vsyncpa [#allocation5], 0  ;;  %s3434_s0 = inlined_call_operand.vmem [shape: f32[7,16,32], index: 0, kind: input, shape index: {}]   ;;  %s3435_s1 = inlined_call_operand.hbm [shape: f32[7,16,16], index: 1, kind: input, shape index: {}]   ;;  %s3436_s2 = inlined_call_operand.vmem [shape: f32[32,32], index: 2, kind: input, shape index: {}]   ;;  %s3437_s3 = inlined_call_operand.hbm [shape: f32[1,32], index: 3, kind: input, shape index: {}]   ;;  %s3438_s4 = inlined_call_operand.vmem [shape: f32[16,16], index: 4, kind: input, shape index: {}]   ;;  %s3439_s5 = inlined_call_operand.hbm [shape: f32[1,16], index: 5, kind: input, shape index: {}]   ;;  %s3440_s6 = inlined_call_operand.hbm [shape: f32[7,32,256], index: 6, kind: input, shape index: {}]   ;;  %s3441_s7 = inlined_call_operand.hbm [shape: f32[7,16,256], index: 7, kind: input, shape index: {}]   ;;  %s3442_s8 = inlined_call_operand.vmem [shape: f32[1,256], index: 8, kind: input, shape index: {}]   ;;  %s3443_s9 = inlined_call_operand.hbm [shape: f32[256,128], index: 9, kind: input, shape index: {}]   ;;  %s3444_s10 = inlined_call_operand.vmem [shape: f32[1,128], index: 10, kind: input, shape index: {}]   ;;  %s3445_s11 = inlined_call_operand.vmem [shape: f32[128,16], index: 11, kind: input, shape index: {}]   ;;  %s3446_s12 = inlined_call_operand.vmem [shape: f32[1,16], index: 12, kind: input, shape index: {}]   ;;  %s3447_s13 = inlined_call_operand.vmem [shape: f32[1,16], index: 13, kind: input, shape index: {}]   ;;  %s3448_s14 = inlined_call_operand.<no memory space> [shape: f32[1,1], index: 14, kind: input, shape index: {}]   ;;  %s3449_s15 = inlined_call_operand.hbm [shape: f32[16,128], index: 15, kind: output, shape index: {}]  }
   0x1   :  { %22 = vsyncpa [#allocation8], 0 }
   0x2   :  { %23 = vsyncpa [#allocation11], 0 }
   0x3   :  { %24 = vsyncpa [#allocation14], 0 }
   0x4   :  { %25 = vsyncpa [#allocation6], 0  ;;  %s2923_s18 = smov [#allocation7]   ;;  %s2924_s20 = smov [#allocation10]  }
   0x5   :  { %s48_s19 = sshll.u32 %s2923_s18, 4  ;;  %s69_s21 = sshll.u32 %s2924_s20, 4  ;;  %s49_s19 = int_to_ptr.vmem [resolvable:$true] %s48_s19  ;;  %s3015_s21 = int_to_ptr.vmem [resolvable:$true] %s69_s21 }
   0x6   :  { %s2759_s24 = scalar_lea.hbm %s3437_s3, 16 }
   0x7   :  { %p2760_p0 = scmp.ne.s32.totalorder %s3437_s3, %s2759_s24  ;;  %p2763_p1 = scmp.lt.u32.totalorder %s2759_s24, %s3437_s3 }
   0x9   :  { %p2765_p2 = pnand %p2763_p1, %p2760_p0 }
   0xb   :  { %2768 = shalt.err (!%p2765_p2)
}
   0xc   :  { %s2769_s29 = scalar_lea.vmem %s49_s19, 16  ;;  %s2773_s30 = scalar_lea.vmem %s49_s19, 32 }
   0xd   :  { %p2770_p3 = scmp.ne.s32.totalorder %s49_s19, %s2769_s29  ;;  %p2774_p4 = scmp.lt.s32.totalorder %s49_s19, %s49_s19 }
   0xe   :  { %p2775_p5 = scmp.lt.s32.totalorder %s2773_s30, %s2769_s29 }
  0x10   :  { %p2776_p6 = por %p2775_p5, %p2774_p4 }
  0x12   :  { %p2777_p7 = pnand %p2776_p6, %p2770_p3 }
  0x14   :  { %2780 = shalt.err (!%p2777_p7)
}
  0x15   :  { %51 = dma.hbm_to_vmem [thread:$0]  %s3437_s3, 16, %s49_s19, [#allocation8]  }
  0x16   :  { %s2781_s22 = scalar_lea.hbm %s3440_s6, 7168 }
  0x17   :  { %p2782_p8 = scmp.ne.s32.totalorder %s3440_s6, %s2781_s22  ;;  %p2785_p9 = scmp.lt.u32.totalorder %s2781_s22, %s3440_s6 }
  0x19   :  { %p2787_p10 = pnand %p2785_p9, %p2782_p8 }
  0x1b   :  { %2790 = shalt.err (!%p2787_p10)
}
  0x1c   :  { %s2791_s27 = scalar_lea.vmem %s3015_s21, 7168  ;;  %p2796_p12 = scmp.lt.s32.totalorder %s3015_s21, %s3015_s21 }
  0x1d   :  { %p2792_p11 = scmp.ne.s32.totalorder %s3015_s21, %s2791_s27  ;;  %p2797_p13 = scmp.lt.s32.totalorder %s2791_s27, %s2791_s27 }
  0x1f   :  { %p2798_p0 = por %p2797_p13, %p2796_p12 }
  0x21   :  { %p2799_p1 = pnand %p2798_p0, %p2792_p11 }
  0x23   :  { %2802 = shalt.err (!%p2799_p1)
}
  0x24   :  { %s3450_s3 = smov 256   ;;  %s2926_s19 = smov 16  }
  0x25   :  { %75 = dma.hbm_to_vmem [thread:$0]  %s3440_s6, 7168, %s3015_s21, [#allocation11], %s3450_s3, %s3450_s3, %s2926_s19  }
  0x26   :  { %s2927_s30 = smov [#allocation4]   ;;  %s2803_s20 = scalar_lea.hbm %s3435_s1, 1792 }
  0x27   :  { %s33_s16 = sshll.u32 %s2927_s30, 4  ;;  %p2804_p2 = scmp.ne.s32.totalorder %s3435_s1, %s2803_s20  ;;  %s34_s16 = int_to_ptr.vmem [resolvable:$true] %s33_s16 }
  0x28   :  { %p2807_p3 = scmp.lt.u32.totalorder %s2803_s20, %s3435_s1 }
  0x2a   :  { %p2809_p4 = pnand %p2807_p3, %p2804_p2 }
  0x2c   :  { %2812 = shalt.err (!%p2809_p4)
}
  0x2d   :  { %s2813_s26 = scalar_lea.vmem %s34_s16, 1792  ;;  %p2818_p6 = scmp.lt.s32.totalorder %s34_s16, %s34_s16 }
  0x2e   :  { %p2814_p5 = scmp.ne.s32.totalorder %s34_s16, %s2813_s26  ;;  %p2819_p7 = scmp.lt.s32.totalorder %s2813_s26, %s2813_s26 }
  0x30   :  { %p2820_p8 = por %p2819_p7, %p2818_p6 }
  0x32   :  { %p2821_p9 = pnand %p2820_p8, %p2814_p5 }
  0x34   :  { %2824 = shalt.err (!%p2821_p9)
}
  0x35   :  { %s2928_s6 = smov 128   ;;  %s2929_s21 = smov 8  }
  0x36   :  { %39 = dma.hbm_to_vmem [thread:$0]  %s3435_s1, 1792, %s34_s16, [#allocation5], %s2928_s6, %s2928_s6, %s2929_s21  }
  0x37   :  { %s2930_s29 = smov [#allocation9]   ;;  %s2931_s17 = smov [#allocation12]  }
  0x38   :  { %s60_s30 = sshll.u32 %s2930_s29, 4  ;;  %s81_s18 = sshll.u32 %s2931_s17, 4  ;;  %s61_s30 = int_to_ptr.vmem [resolvable:$true] %s60_s30  ;;  %s82_s18 = int_to_ptr.vmem [resolvable:$true] %s81_s18 }
  0x39   :  { %s2825_s23 = scalar_lea.hbm %s3439_s5, 16 }
  0x3a   :  { %p2826_p10 = scmp.ne.s32.totalorder %s3439_s5, %s2825_s23  ;;  %p2829_p11 = scmp.lt.u32.totalorder %s2825_s23, %s3439_s5 }
  0x3c   :  { %p2831_p12 = pnand %p2829_p11, %p2826_p10 }
  0x3e   :  { %2834 = shalt.err (!%p2831_p12)
}
  0x3f   :  { %s2835_s1 = scalar_lea.vmem %s61_s30, 16  ;;  %s2839_s16 = scalar_lea.vmem %s61_s30, 32 }
  0x40   :  { %p2836_p13 = scmp.ne.s32.totalorder %s61_s30, %s2835_s1  ;;  %p2840_p0 = scmp.lt.s32.totalorder %s61_s30, %s61_s30 }
  0x41   :  { %p2841_p1 = scmp.lt.s32.totalorder %s2839_s16, %s2835_s1 }
  0x43   :  { %p2842_p2 = por %p2841_p1, %p2840_p0 }
  0x45   :  { %p2843_p3 = pnand %p2842_p2, %p2836_p13 }
  0x47   :  { %2846 = shalt.err (!%p2843_p3)
}
  0x48   :  { %63 = dma.hbm_to_vmem [thread:$0]  %s3439_s5, 16, %s61_s30, [#allocation8]  }
  0x49   :  { %s2847_s3 = scalar_lea.hbm %s3441_s7, 3584 }
  0x4a   :  { %p2848_p4 = scmp.ne.s32.totalorder %s3441_s7, %s2847_s3  ;;  %p2851_p5 = scmp.lt.u32.totalorder %s2847_s3, %s3441_s7 }
  0x4c   :  { %p2853_p6 = pnand %p2851_p5, %p2848_p4 }
  0x4e   :  { %2856 = shalt.err (!%p2853_p6)
}
  0x4f   :  { %s2857_s25 = scalar_lea.vmem %s82_s18, 3584  ;;  %p2862_p8 = scmp.lt.s32.totalorder %s82_s18, %s82_s18 }
  0x50   :  { %p2858_p7 = scmp.ne.s32.totalorder %s82_s18, %s2857_s25  ;;  %p2863_p9 = scmp.lt.s32.totalorder %s2857_s25, %s2857_s25 }
  0x52   :  { %p2864_p10 = por %p2863_p9, %p2862_p8 }
  0x54   :  { %p2865_p11 = pnand %p2864_p10, %p2858_p7 }
  0x56   :  { %2868 = shalt.err (!%p2865_p11)
}
  0x57   :  { %s3451_s5 = smov 256   ;;  %s2932_s1 = smov [#allocation13]  }
  0x58   :  { %87 = dma.hbm_to_vmem [thread:$0]  %s3441_s7, 3584, %s82_s18, [#allocation11], %s3451_s5, %s3451_s5, %s2926_s19  }
  0x59   :  { %s95_s16 = sshll.u32 %s2932_s1, 4  ;;  %s2869_s29 = scalar_lea.hbm %s3443_s9, 4096  ;;  %s96_s16 = int_to_ptr.vmem [resolvable:$true] %s95_s16 }
  0x5a   :  { %p2870_p12 = scmp.ne.s32.totalorder %s3443_s9, %s2869_s29  ;;  %p2873_p13 = scmp.lt.u32.totalorder %s2869_s29, %s3443_s9 }
  0x5c   :  { %p2875_p0 = pnand %p2873_p13, %p2870_p12 }
  0x5e   :  { %2878 = shalt.err (!%p2875_p0)
}
  0x5f   :  { %s2879_s23 = scalar_lea.vmem %s96_s16, 4096  ;;  %p2884_p2 = scmp.lt.s32.totalorder %s96_s16, %s96_s16 }
  0x60   :  { %p2880_p1 = scmp.ne.s32.totalorder %s96_s16, %s2879_s23  ;;  %p2885_p3 = scmp.lt.s32.totalorder %s2879_s23, %s2879_s23 }
  0x62   :  { %p2886_p4 = por %p2885_p3, %p2884_p2 }
  0x64   :  { %p2887_p5 = pnand %p2886_p4, %p2880_p1 }
  0x66   :  { %2890 = shalt.err (!%p2887_p5)
}
  0x67   :  { %101 = dma.hbm_to_vmem [thread:$0]  %s3443_s9, 4096, %s96_s16, [#allocation14], %s2928_s6, %s2928_s6, %s2929_s21  }
  0x68   :  { %2913 = dma.done.wait [#allocation5], 1792  }
  0x69   :  { %2914 = vsyncadd [#allocation5], 4294965504 }
  0x6a   :  { %2915 = dma.done.wait [#allocation8], 32  }
  0x6b   :  { %2916 = vsyncadd [#allocation8], 4294967264 }
  0x6c   :  { %2917 = dma.done.wait [#allocation11], 10752  }
  0x6d   :  { %2918 = vsyncadd [#allocation11], 4294956544 }
  0x6e   :  { %2919 = dma.done.wait [#allocation14], 4096  }
  0x6f   :  { %2920 = vsyncadd [#allocation14], 4294963200  ;;  %vm169_vm0 = vcmask 261120   ;;  %v158_v0 = vld [vmem:[%s3436_s2] sm:$0xff]  ;;  %v159_v1 = vld [vmem:[%s3436_s2 + $0x8] sm:$0xff]  ;;  %vm370_vm1 = vcmask 130048  }
  0x70   :  { %v160_v2 = vld [vmem:[%s3436_s2 + $0x10] sm:$0xff]  ;;  %v2523_v3 = vpack.c.bf16 %v159_v1, %v158_v0  ;;  %v161_v4 = vld [vmem:[%s3436_s2 + $0x18] sm:$0xff]  ;;  %v130_v5 = vld [vmem:[%s3434_s0] sm:$0xff]  ;;  %v2933_v46 = vmov 0.0  }
  0x71   :  { %v2527_v6 = vpack.c.bf16 %v161_v4, %v160_v2  ;;  %2442 = vmatprep.mubr.msk.f32.mxu0 %vm169_vm0, %v130_v5  ;;  %v361_v7 = vld [vmem:[%s3438_s4] sm:$0xff]  ;;  %v362_v8 = vld [vmem:[%s3438_s4 + $0x8] sm:$0xff]  ;;  %v132_v11 = vld [vmem:[%s3434_s0 + $0x10] sm:$0xff]  ;;  %656 = vmatprep.mubr.f32.mxu1 %v2933_v46 }
  0x72   :  { %2524 = vmatprep.subr.bf16.mxu0 %v2523_v3  ;;  %v2531_v9 = vpack.c.bf16 %v362_v8, %v361_v7  ;;  %v131_v10 = vld [vmem:[%s3434_s0 + $0x8] sm:$0xff]  ;;  %v133_v12 = vld [vmem:[%s3434_s0 + $0x18] sm:$0xff]  ;;  %v134_v13 = vld [vmem:[%s3434_s0 + $0x20] sm:$0xff] }
  0x73   :  { %2526 = vmatpush3.bf16.msra.mxu0 %v2523_v3  ;;  %v135_v14 = vld [vmem:[%s3434_s0 + $0x28] sm:$0xff]  ;;  %v136_v15 = vld [vmem:[%s3434_s0 + $0x30] sm:$0xff]  ;;  %v137_v16 = vld [vmem:[%s3434_s0 + $0x38] sm:$0xff] }
  0x74   :  { %2528 = vmatprep.subr.bf16.mxu0 %v2527_v6  ;;  %v138_v17 = vld [vmem:[%s3434_s0 + $0x40] sm:$0xff]  ;;  %v139_v18 = vld [vmem:[%s3434_s0 + $0x48] sm:$0xff]  ;;  %v140_v19 = vld [vmem:[%s3434_s0 + $0x50] sm:$0xff] }
  0x75   :  { %v141_v20 = vld [vmem:[%s3434_s0 + $0x58] sm:$0xff]  ;;  %v142_v21 = vld [vmem:[%s3434_s0 + $0x60] sm:$0xff]  ;;  %v143_v22 = vld [vmem:[%s3434_s0 + $0x68] sm:$0xff] }
  0x76   :  { %v144_v23 = vld [vmem:[#allocation4] sm:$0xff]  ;;  %v145_v24 = vld [vmem:[#allocation4 + $0x8] sm:$0xff]  ;;  %v146_v25 = vld [vmem:[#allocation4 + $0x10] sm:$0xff] }
  0x77   :  { %2530 = vmatpush3.bf16.msra.mxu0 %v2527_v6  ;;  %v147_v26 = vld [vmem:[#allocation4 + $0x18] sm:$0xff]  ;;  %v148_v27 = vld [vmem:[#allocation4 + $0x20] sm:$0xff]  ;;  %v149_v28 = vld [vmem:[#allocation4 + $0x28] sm:$0xff] }
  0x78   :  { %2532 = vmatprep.subr.bf16.mxu0 %v2531_v9  ;;  %v150_v29 = vld [vmem:[#allocation4 + $0x30] sm:$0xff]  ;;  %v151_v30 = vld [vmem:[#allocation4 + $0x38] sm:$0xff]  ;;  %v152_v31 = vld [vmem:[#allocation4 + $0x40] sm:$0xff] }
  0x79   :  { %v153_v32 = vld [vmem:[#allocation4 + $0x48] sm:$0xff]  ;;  %v154_v33 = vld [vmem:[#allocation4 + $0x50] sm:$0xff]  ;;  %v155_v34 = vld [vmem:[#allocation4 + $0x58] sm:$0xff] }
  0x7a   :  { %2443 = vmatmul.mubr.msk.f32.vlgmr.msra.gmra.mrb[0].mxu0 %vm169_vm0, %v131_v10  ;;  %v156_v35 = vld [vmem:[#allocation4 + $0x60] sm:$0xff]  ;;  %v157_v36 = vld [vmem:[#allocation4 + $0x68] sm:$0xff]  ;;  %v582_v40 = vld [vmem:[#allocation12] sm:$0xff] }
  0x7b   :  { %2534 = vmatpush3.bf16.msra.mxu0 %v2531_v9  ;;  %2445 = vmatprep.mubr.msk.f32.mxu0 %vm169_vm0, %v132_v11  ;;  %v583_v37 = vld [vmem:[#allocation12 + $0x8] sm:$0xff]  ;;  %v585_v38 = vld [vmem:[#allocation12 + $0x18] sm:$0xff]  ;;  %v584_v41 = vld [vmem:[#allocation12 + $0x10] sm:$0xff] }
  0x7c   :  { %v2535_v39 = vpack.c.bf16 %v585_v38, %v583_v37  ;;  %v2537_v42 = vpack.c.bf16 %v584_v41, %v582_v40  ;;  %v682_v43 = vld [vmem:[#allocation10 + $0x8] sm:$0xff]  ;;  %v684_v44 = vld [vmem:[#allocation10 + $0x18] sm:$0xff]  ;;  %v2028_v56 = vld [vmem:[#allocation13 + $0x80] sm:$0xff] }
  0x7d   :  { %v2539_v45 = vpack.c.bf16 %v684_v44, %v682_v43  ;;  %v3211_v55 = vld [vmem:[#allocation7] ss:$0 sm:$0xff]  ;;  %v2029_v57 = vld [vmem:[#allocation13 + $0x88] sm:$0xff]  ;;  %v2012_v58 = vld [vmem:[#allocation13] sm:$0xff] }
  0x7e   :  { %2446 = vmatmul.mubr.msk.f32.gmra.mrb[2].mxu0 %vm169_vm0, %v133_v12  ;;  %2536 = vmatprep.subr.bf16.mxu1 %v2535_v39  ;;  %v2619_v59 = vpack.c.bf16 %v2029_v57, %v2028_v56  ;;  %v2013_v60 = vld [vmem:[#allocation13 + $0x8] sm:$0xff]  ;;  %v2030_v61 = vld [vmem:[#allocation13 + $0x90] sm:$0xff]  ;;  %v2031_v62 = vld [vmem:[#allocation13 + $0x98] sm:$0xff] }
  0x7f   :  { %2448 = vmatprep.mubr.msk.f32.mxu0 %vm169_vm0, %v134_v13  ;;  %2538 = vmatpush1.bf16.msra.mxu1 %v2537_v42  ;;  %v2621_v0 = vpack.c.bf16 %v2013_v60, %v2012_v58  ;;  %v2623_v1 = vpack.c.bf16 %v2031_v62, %v2030_v61  ;;  %v2014_v2 = vld [vmem:[#allocation13 + $0x10] sm:$0xff]  ;;  %v2015_v3 = vld [vmem:[#allocation13 + $0x18] sm:$0xff]  ;;  %v2032_v4 = vld [vmem:[#allocation13 + $0xa0] sm:$0xff] }
  0x80   :  { %2540 = vmatprep.subr.bf16.mxu1 %v2539_v45  ;;  %2620 = vmatprep.subr.bf16.mxu0 %v2619_v59  ;;  %v2033_v7 = vld [vmem:[#allocation13 + $0xa8] sm:$0xff]  ;;  %v2625_v9 = vpack.c.bf16 %v2015_v3, %v2014_v2  ;;  %v2016_v11 = vld [vmem:[#allocation13 + $0x20] sm:$0xff]  ;;  %v688_v39 = vld [vmem:[#allocation10 + $0x38] sm:$0xff] }
  0x81   :  { %v2627_v10 = vpack.c.bf16 %v2033_v7, %v2032_v4  ;;  %v2017_v12 = vld [vmem:[#allocation13 + $0x28] sm:$0xff]  ;;  %v2038_v40 = vld [vmem:[#allocation13 + $0xd0] sm:$0xff]  ;;  %v2039_v41 = vld [vmem:[#allocation13 + $0xd8] sm:$0xff] }
  0x82   :  { %2449 = vmatmul.mubr.msk.f32.gmra.mrb[4].mxu0 %vm169_vm0, %v135_v14  ;;  %v2034_v14 = vld [vmem:[#allocation13 + $0xb0] sm:$0xff]  ;;  %v686_v37 = vld [vmem:[#allocation10 + $0x28] sm:$0xff]  ;;  %v2023_v56 = vld [vmem:[#allocation13 + $0x58] sm:$0xff] }
  0x83   :  { %2451 = vmatprep.mubr.msk.f32.mxu0 %vm169_vm0, %v136_v15  ;;  %v2035_v15 = vld [vmem:[#allocation13 + $0xb8] sm:$0xff]  ;;  %v2022_v45 = vld [vmem:[#allocation13 + $0x50] sm:$0xff]  ;;  %v2543_v59 = vpack.c.bf16 %v688_v39, %v686_v37  ;;  %v685_v60 = vld [vmem:[#allocation10 + $0x20] sm:$0xff] }
  0x84   :  { %v687_v61 = vld [vmem:[#allocation10 + $0x30] sm:$0xff]  ;;  %v786_v62 = vld [vmem:[#allocation12 + $0x28] sm:$0xff]  ;;  %v2040_v3 = vld [vmem:[#allocation13 + $0xe0] sm:$0xff] }
  0x85   :  { %v2041_v4 = vld [vmem:[#allocation13 + $0xe8] sm:$0xff]  ;;  %v2545_v7 = vpack.c.bf16 %v687_v61, %v685_v60 }
  0x86   :  { %2452 = vmatmul.mubr.msk.f32.gmra.mrb[6].mxu0 %vm169_vm0, %v137_v16 }
  0x87   :  { %2454 = vmatprep.mubr.msk.f32.mxu0 %vm169_vm0, %v138_v17 }
  0x8a   :  { %2455 = vmatmul.mubr.msk.f32.gmra.mrb[8].mxu0 %vm169_vm0, %v139_v18 }
  0x8b   :  { %2457 = vmatprep.mubr.msk.f32.mxu0 %vm169_vm0, %v140_v19  ;;  %v2629_v19 = vpack.c.bf16 %v2017_v12, %v2016_v11  ;;  %v785_v12 = vld [vmem:[#allocation12 + $0x20] sm:$0xff] }
  0x8e   :  { %2458 = vmatmul.mubr.msk.f32.gmra.mrb[10].mxu0 %vm169_vm0, %v141_v20  ;;  %v2631_v20 = vpack.c.bf16 %v2035_v15, %v2034_v14  ;;  %v2643_v15 = vpack.c.bf16 %v2041_v4, %v2040_v3  ;;  %v1090_v3 = vld [vmem:[#allocation10 + $0x88] sm:$0xff]  ;;  %v1092_v4 = vld [vmem:[#allocation10 + $0x98] sm:$0xff] }
  0x8f   :  { %2460 = vmatprep.mubr.msk.f32.mxu0 %vm169_vm0, %v142_v21  ;;  %v2018_v21 = vld [vmem:[#allocation13 + $0x30] sm:$0xff] }
  0x92   :  { %2461 = vmatmul.mubr.msk.f32.gmra.mrb[12].mxu0 %vm169_vm0, %v143_v22  ;;  %v2019_v22 = vld [vmem:[#allocation13 + $0x38] sm:$0xff] }
  0x93   :  { %2467 = vmatprep.mubr.msk.f32.mxu0 %vm370_vm1, %v144_v23 }
  0x96   :  { %2468 = vmatmul.mubr.msk.f32.vlgmr.msra.gmra.mrb[14].mxu0 %vm370_vm1, %v145_v24  ;;  %v2036_v24 = vld [vmem:[#allocation13 + $0xc0] sm:$0xff] }
  0x97   :  { %2470 = vmatprep.mubr.msk.f32.mxu0 %vm370_vm1, %v146_v25  ;;  %2622 = vmatpush3.bf16.msra.mxu0 %v2621_v0  ;;  %v2037_v25 = vld [vmem:[#allocation13 + $0xc8] sm:$0xff]  ;;  %v2639_v0 = vpack.c.bf16 %v2039_v41, %v2038_v40 }
  0x98   :  { %2624 = vmatprep.subr.bf16.mxu0 %v2623_v1  ;;  %v788_v1 = vld [vmem:[#allocation12 + $0x38] sm:$0xff] }
  0x99   :  { %v2547_v11 = vpack.c.bf16 %v788_v1, %v786_v62  ;;  %v991_v1 = vld [vmem:[#allocation12 + $0x50] sm:$0xff] }
  0x9a   :  { %2471 = vmatmul.mubr.msk.f32.gmra.mrb[16].mxu0 %vm370_vm1, %v147_v26 }
  0x9b   :  { %2473 = vmatprep.mubr.msk.f32.mxu0 %vm370_vm1, %v148_v27  ;;  %2626 = vmatpush3.bf16.msra.mxu0 %v2625_v9 }
  0x9c   :  { %2628 = vmatprep.subr.bf16.mxu0 %v2627_v10 }
  0x9e   :  { %2474 = vmatmul.mubr.msk.f32.gmra.mrb[18].mxu0 %vm370_vm1, %v149_v28 }
  0x9f   :  { %2476 = vmatprep.mubr.msk.f32.mxu0 %vm370_vm1, %v150_v29  ;;  %2630 = vmatpush3.bf16.msra.mxu0 %v2629_v19  ;;  %v2633_v29 = vpack.c.bf16 %v2019_v22, %v2018_v21  ;;  %v888_v19 = vld [vmem:[#allocation10 + $0x58] sm:$0xff] }
  0xa0   :  { %2632 = vmatprep.subr.bf16.mxu0 %v2631_v20 }
  0xa2   :  { %2477 = vmatmul.mubr.msk.f32.gmra.mrb[20].mxu0 %vm370_vm1, %v151_v30  ;;  %v3231_v30 = vld [vmem:[#allocation9] ss:$0 sm:$0xff] }
  0xa3   :  { %2479 = vmatprep.mubr.msk.f32.mxu0 %vm370_vm1, %v152_v31  ;;  %v2635_v31 = vpack.c.bf16 %v2037_v25, %v2036_v24  ;;  %2634 = vmatpush3.bf16.msra.mxu0 %v2633_v29 }
  0xa5   :  { %2636 = vmatprep.subr.bf16.mxu0 %v2635_v31  ;;  %v885_v31 = vld [vmem:[#allocation10 + $0x40] sm:$0xff] }
  0xa6   :  { %2480 = vmatmul.mubr.msk.f32.gmra.mrb[22].mxu0 %vm370_vm1, %v153_v32  ;;  %v2020_v32 = vld [vmem:[#allocation13 + $0x40] sm:$0xff] }
  0xa7   :  { %2482 = vmatprep.mubr.msk.f32.mxu0 %vm370_vm1, %v154_v33  ;;  %v2021_v33 = vld [vmem:[#allocation13 + $0x48] sm:$0xff] }
  0xa8   :  { %v2637_v43 = vpack.c.bf16 %v2021_v33, %v2020_v32  ;;  %v887_v32 = vld [vmem:[#allocation10 + $0x50] sm:$0xff]  ;;  %v890_v33 = vld [vmem:[#allocation10 + $0x68] sm:$0xff] }
  0xa9   :  { %v2553_v39 = vpack.c.bf16 %v887_v32, %v885_v31  ;;  %v1194_v31 = vld [vmem:[#allocation12 + $0x68] sm:$0xff]  ;;  %v1196_v32 = vld [vmem:[#allocation12 + $0x78] sm:$0xff] }
  0xaa   :  { %2483 = vmatmul.mubr.msk.f32.gmra.mrb[24].mxu0 %vm370_vm1, %v155_v34 }
  0xab   :  { %2485 = vmatprep.mubr.msk.f32.mxu0 %vm370_vm1, %v156_v35  ;;  %v681_v35 = vld [vmem:[#allocation10] sm:$0xff]  ;;  %2638 = vmatpush3.bf16.msra.mxu0 %v2637_v43  ;;  %v891_v43 = vld [vmem:[#allocation10 + $0x70] sm:$0xff] }
  0xac   :  { %2640 = vmatprep.subr.bf16.mxu0 %v2639_v0  ;;  %v989_v0 = vld [vmem:[#allocation12 + $0x40] sm:$0xff] }
  0xae   :  { %2486 = vmatmul.mubr.msk.f32.gmra.mrb[26].mxu0 %vm370_vm1, %v157_v36  ;;  %v683_v36 = vld [vmem:[#allocation10 + $0x10] sm:$0xff] }
  0xaf   :  { %v2541_v44 = vpack.c.bf16 %v683_v36, %v681_v35 }
 0x14d   :  { %v3195_v47 = vpop.f32.mrb[0].mxu0 }
 0x14e   :  { %v3197_v48 = vpop.f32.mrb[1].mxu0  ;;  %v284_v21 = vadd.f32 %v3195_v47, %v3211_v55 }
 0x14f   :  { %v279_v9 = vadd.f32 %v3211_v55, %v3197_v48 }
 0x150   :  { %v348_v29 = vmax.f32 %v284_v21, 0.0  ;;  %v1096_v21 = vld [vmem:[#allocation10 + $0xb8] sm:$0xff] }
 0x151   :  { %v3199_v49 = vpop.f32.mrb[2].mxu0  ;;  %v347_v22 = vmax.f32 %v279_v9, 0.0 }
 0x152   :  { %v3201_v50 = vpop.f32.mrb[3].mxu0 }
 0x153   :  { %v289_v61 = vadd.f32 %v3211_v55, %v3201_v50  ;;  %v2561_v50 = vpack.c.bf16 %v991_v1, %v989_v0  ;;  %v1299_v1 = vld [vmem:[#allocation10 + $0xf0] sm:$0xff] }
 0x155   :  { %v3203_v51 = vpop.f32.mrb[4].mxu0 }
 0x156   :  { %v3205_v52 = vpop.f32.mrb[5].mxu0 }
 0x159   :  { %v3207_v53 = vpop.f32.mrb[6].mxu0 }
 0x15a   :  { %v3209_v54 = vpop.f32.mrb[7].mxu0 }
 0x15d   :  { %v2456_v63 = vpop.f32.mrb[8].mxu0 }
 0x15e   :  { %v3214_v5 = vadd.f32 %v2456_v63, %v3211_v55  ;;  %v318_v6 = vpop.f32.mrb[9].mxu0 }
 0x15f   :  { %v3217_v8 = vadd.f32 %v3211_v55, %v318_v6  ;;  %v2641_v6 = vpack.c.bf16 %v2023_v56, %v2022_v45  ;;  %v990_v45 = vld [vmem:[#allocation12 + $0x48] sm:$0xff]  ;;  %v992_v56 = vld [vmem:[#allocation12 + $0x58] sm:$0xff] }
 0x161   :  { %v2459_v13 = vpop.f32.mrb[10].mxu0  ;;  %2642 = vmatpush3.bf16.msra.mxu0 %v2641_v6 }
 0x162   :  { %v3220_v16 = vadd.f32 %v2459_v13, %v3211_v55  ;;  %v328_v17 = vpop.f32.mrb[11].mxu0  ;;  %v787_v13 = vld [vmem:[#allocation12 + $0x30] sm:$0xff]  ;;  %2644 = vmatprep.subr.bf16.mxu0 %v2643_v15 }
 0x163   :  { %v3223_v18 = vadd.f32 %v3211_v55, %v328_v17  ;;  %v886_v17 = vld [vmem:[#allocation10 + $0x48] sm:$0xff]  ;;  %v2549_v48 = vpack.c.bf16 %v787_v13, %v785_v12  ;;  %v2563_v12 = vpack.c.bf16 %v1092_v4, %v1090_v3  ;;  %v1400_v3 = vld [vmem:[#allocation12 + $0x98] sm:$0xff] }
 0x165   :  { %v2462_v23 = vpop.f32.mrb[12].mxu0 }
 0x166   :  { %v3226_v26 = vadd.f32 %v2462_v23, %v3211_v55  ;;  %v338_v27 = vpop.f32.mrb[13].mxu0  ;;  %v2551_v23 = vpack.c.bf16 %v888_v19, %v886_v17  ;;  %v1089_v17 = vld [vmem:[#allocation10 + $0x80] sm:$0xff]  ;;  %v1091_v19 = vld [vmem:[#allocation10 + $0x90] sm:$0xff] }
 0x167   :  { %v3229_v28 = vadd.f32 %v3211_v55, %v338_v27 }
 0x169   :  { %v2469_v34 = vpop.f32.mrb[14].mxu0 }
 0x16a   :  { %v479_v38 = vpop.f32.mrb[15].mxu0  ;;  %v485_v57 = vadd.f32 %v2469_v34, %v3231_v30  ;;  %v892_v34 = vld [vmem:[#allocation10 + $0x78] sm:$0xff] }
 0x16b   :  { %v480_v42 = vadd.f32 %v3231_v30, %v479_v38  ;;  %v2555_v41 = vpack.c.bf16 %v892_v34, %v890_v33  ;;  %v299_v33 = vadd.f32 %v3211_v55, %v3205_v52 }
 0x16c   :  { %v549_v10 = vmax.f32 %v485_v57, 0.0 }
 0x16d   :  { %v548_v58 = vmax.f32 %v480_v42, 0.0  ;;  %v2472_v63 = vpop.f32.mrb[16].mxu0  ;;  %v889_v42 = vld [vmem:[#allocation10 + $0x60] sm:$0xff] }
 0x16e   :  { %v489_v2 = vpop.f32.mrb[17].mxu0  ;;  %v495_v40 = vadd.f32 %v2472_v63, %v3231_v30  ;;  %v2557_v60 = vpack.c.bf16 %v891_v43, %v889_v42  ;;  %v2559_v63 = vpack.c.bf16 %v992_v56, %v990_v45  ;;  %v304_v42 = vadd.f32 %v3203_v51, %v3211_v55  ;;  %v1293_v56 = vld [vmem:[#allocation10 + $0xc0] sm:$0xff] }
 0x16f   :  { %2311 = vmatmul.mubr.msk.f32.vlgmr.msra.gmra.mrb[0].mxu1 %vm370_vm1, %v548_v58  ;;  %v490_v27 = vadd.f32 %v3231_v30, %v489_v2  ;;  %v351_v43 = vmax.f32 %v299_v33, 0.0  ;;  %v1601_v33 = vld [vmem:[#allocation12 + $0xa0] sm:$0xff] }
 0x170   :  { %2542 = vmatpush1.bf16.msra.mxu1 %v2541_v44  ;;  %662 = vmatprep.mubr.f32.mxu1 %v2933_v46  ;;  %v551_v62 = vmax.f32 %v495_v40, 0.0  ;;  %v1296_v40 = vld [vmem:[#allocation10 + $0xd8] sm:$0xff]  ;;  %v352_v45 = vmax.f32 %v304_v42, 0.0  ;;  %v1703_v42 = vld [vmem:[#allocation10 + $0x150] sm:$0xff] }
 0x171   :  { %2544 = vmatprep.subr.bf16.mxu1 %v2543_v59  ;;  %v3239_v14 = vpop.f32.mrb[18].mxu0  ;;  %v550_v37 = vmax.f32 %v490_v27, 0.0 }
 0x172   :  { %v3241_v20 = vpop.f32.mrb[19].mxu0 }
 0x173   :  { %2312 = vmatmul.mubr.msk.f32.gmra.mrb[2].mxu1 %vm370_vm1, %v549_v10  ;;  %v294_v10 = vadd.f32 %v3199_v49, %v3211_v55  ;;  %v500_v13 = vadd.f32 %v3231_v30, %v3241_v20  ;;  %v2565_v49 = vpack.c.bf16 %v1091_v19, %v1089_v17  ;;  %v1093_v20 = vld [vmem:[#allocation10 + $0xa0] sm:$0xff] }
 0x174   :  { %2546 = vmatpush1.bf16.msra.mxu1 %v2545_v7  ;;  %759 = vmatprep.mubr.f32.mxu1 %v2933_v46 }
 0x175   :  { %2548 = vmatprep.subr.bf16.mxu1 %v2547_v11  ;;  %v3247_v24 = vpop.f32.mrb[20].mxu0  ;;  %v349_v11 = vmax.f32 %v289_v61, 0.0  ;;  %v350_v15 = vmax.f32 %v294_v10, 0.0  ;;  %v1300_v61 = vld [vmem:[#allocation10 + $0xf8] sm:$0xff] }
 0x176   :  { %v3249_v25 = vpop.f32.mrb[21].mxu0 }
 0x177   :  { %2313 = vmatmul.mubr.msk.f32.vlgmr.msra.gmra.mrb[0].mxu1 %vm169_vm0, %v347_v22  ;;  %v552_v22 = vmax.f32 %v500_v13, 0.0  ;;  %v510_v52 = vadd.f32 %v3231_v30, %v3249_v25  ;;  %v1297_v25 = vld [vmem:[#allocation10 + $0xe0] sm:$0xff] }
 0x178   :  { %2550 = vmatpush1.bf16.msra.mxu1 %v2549_v48  ;;  %765 = vmatprep.mubr.f32.mxu1 %v2933_v46  ;;  %v1094_v48 = vld [vmem:[#allocation10 + $0xa8] sm:$0xff]  ;;  %v2581_v4 = vpack.c.bf16 %v1299_v1, %v1297_v25  ;;  %v1908_v25 = vld [vmem:[#allocation10 + $0x198] sm:$0xff] }
 0x179   :  { %2552 = vmatprep.subr.bf16.mxu1 %v2551_v23  ;;  %v2481_v47 = vpop.f32.mrb[22].mxu0  ;;  %v505_v23 = vadd.f32 %v3239_v14, %v3231_v30  ;;  %v2567_v27 = vpack.c.bf16 %v1096_v21, %v1094_v48  ;;  %v1294_v14 = vld [vmem:[#allocation10 + $0xc8] sm:$0xff]  ;;  %v1497_v48 = vld [vmem:[#allocation10 + $0x100] sm:$0xff]  ;;  %v1499_v21 = vld [vmem:[#allocation10 + $0x110] sm:$0xff] }
 0x17a   :  { %v3255_v35 = vadd.f32 %v2481_v47, %v3231_v30  ;;  %v519_v36 = vpop.f32.mrb[23].mxu0 }
 0x17b   :  { %2314 = vmatmul.mubr.msk.f32.gmra.mrb[2].mxu1 %vm169_vm0, %v348_v29  ;;  %v3259_v38 = vadd.f32 %v3231_v30, %v519_v36  ;;  %v1095_v29 = vld [vmem:[#allocation10 + $0xb0] sm:$0xff]  ;;  %v553_v34 = vmax.f32 %v505_v23, 0.0  ;;  %v2571_v36 = vpack.c.bf16 %v1196_v32, %v1194_v31  ;;  %v1604_v31 = vld [vmem:[#allocation12 + $0xb8] sm:$0xff] }
 0x17c   :  { %859 = vmatprep.mubr.f32.mxu1 %v2933_v46  ;;  %v2569_v47 = vpack.c.bf16 %v1095_v29, %v1093_v20  ;;  %v1503_v20 = vld [vmem:[#allocation10 + $0x130] sm:$0xff]  ;;  %v1602_v29 = vld [vmem:[#allocation12 + $0xa8] sm:$0xff] }
 0x17d   :  { %v2484_v44 = vpop.f32.mrb[24].mxu0  ;;  %v556_v23 = vmax.f32 %v3259_v38, 0.0  ;;  %v2595_v38 = vpack.c.bf16 %v1604_v31, %v1602_v29 }
 0x17e   :  { %v3264_v57 = vadd.f32 %v2484_v44, %v3231_v30  ;;  %v529_v58 = vpop.f32.mrb[25].mxu0  ;;  %v2575_v44 = vpack.c.bf16 %v1296_v40, %v1294_v14  ;;  %v355_v14 = vmax.f32 %v3217_v8, 0.0 }
 0x17f   :  { %2315 = vmatmul.mubr.msk.f32.vlgmr.msra.gmra.mrb[0].mxu1 %vm370_vm1, %v550_v37  ;;  %v3268_v59 = vadd.f32 %v3231_v30, %v529_v58  ;;  %v1193_v37 = vld [vmem:[#allocation12 + $0x60] sm:$0xff]  ;;  %v1295_v58 = vld [vmem:[#allocation10 + $0xd0] sm:$0xff] }
 0x180   :  { %2554 = vmatpush1.bf16.msra.mxu1 %v2553_v39  ;;  %865 = vmatprep.mubr.f32.mxu1 %v2933_v46  ;;  %v1195_v39 = vld [vmem:[#allocation12 + $0x70] sm:$0xff]  ;;  %v2577_v51 = vpack.c.bf16 %v1295_v58, %v1293_v56  ;;  %v1705_v56 = vld [vmem:[#allocation10 + $0x160] sm:$0xff] }
 0x181   :  { %2556 = vmatprep.subr.bf16.mxu1 %v2555_v41  ;;  %v2487_v2 = vpop.f32.mrb[26].mxu0  ;;  %v2573_v41 = vpack.c.bf16 %v1195_v39, %v1193_v37  ;;  %v1704_v37 = vld [vmem:[#allocation10 + $0x158] sm:$0xff]  ;;  %v1707_v58 = vld [vmem:[#allocation10 + $0x170] sm:$0xff] }
 0x182   :  { %v3274_v6 = vadd.f32 %v2487_v2, %v3231_v30  ;;  %v539_v7 = vpop.f32.mrb[27].mxu0  ;;  %v1398_v2 = vld [vmem:[#allocation12 + $0x88] sm:$0xff] }
 0x183   :  { %2316 = vmatmul.mubr.msk.f32.gmra.mrb[2].mxu1 %vm370_vm1, %v551_v62  ;;  %v3278_v9 = vadd.f32 %v3231_v30, %v539_v7  ;;  %v554_v62 = vmax.f32 %v510_v52, 0.0  ;;  %v309_v7 = vadd.f32 %v3211_v55, %v3209_v54  ;;  %v2583_v10 = vpack.c.bf16 %v1400_v3, %v1398_v2 }
 0x184   :  { %2558 = vmatpush1.bf16.msra.mxu1 %v2557_v60  ;;  %963 = vmatprep.mubr.f32.mxu1 %v2933_v46  ;;  %v1298_v60 = vld [vmem:[#allocation10 + $0xe8] sm:$0xff]  ;;  %v558_v52 = vmax.f32 %v3268_v59, 0.0  ;;  %v357_v2 = vmax.f32 %v3223_v18, 0.0 }
 0x185   :  { %2560 = vmatprep.subr.bf16.mxu1 %v2559_v63  ;;  %v515_v63 = vadd.f32 %v3247_v24, %v3231_v30  ;;  %v2579_v0 = vpack.c.bf16 %v1300_v61, %v1298_v60  ;;  %v1498_v30 = vld [vmem:[#allocation10 + $0x108] sm:$0xff]  ;;  %v1500_v24 = vld [vmem:[#allocation10 + $0x118] sm:$0xff]  ;;  %v353_v17 = vmax.f32 %v309_v7, 0.0  ;;  %v1907_v7 = vld [vmem:[#allocation10 + $0x190] sm:$0xff] }
 0x186   :  { %v2587_v19 = vpack.c.bf16 %v1500_v24, %v1498_v30  ;;  %v1806_v60 = vld [vmem:[#allocation12 + $0xc8] sm:$0xff]  ;;  %v1808_v61 = vld [vmem:[#allocation12 + $0xd8] sm:$0xff]  ;;  %v1909_v30 = vld [vmem:[#allocation10 + $0x1a0] sm:$0xff] }
 0x187   :  { %2317 = vmatmul.mubr.msk.f32.vlgmr.msra.gmra.mrb[0].mxu1 %vm169_vm0, %v349_v11  ;;  %v1397_v11 = vld [vmem:[#allocation12 + $0x80] sm:$0xff]  ;;  %v2607_v59 = vpack.c.bf16 %v1808_v61, %v1806_v60  ;;  %v1911_v24 = vld [vmem:[#allocation10 + $0x1b0] sm:$0xff] }
 0x188   :  { %2562 = vmatpush1.bf16.msra.mxu1 %v2561_v50  ;;  %969 = vmatprep.mubr.f32.mxu1 %v2933_v46  ;;  %v555_v50 = vmax.f32 %v515_v63, 0.0  ;;  %v1807_v63 = vld [vmem:[#allocation12 + $0xd0] sm:$0xff]  ;;  %v2135_v60 = vld [vmem:[%s3445_s11 + $0x38] sm:$0xff] }
 0x189   :  { %2564 = vmatprep.subr.bf16.mxu1 %v2563_v12  ;;  %v1399_v12 = vld [vmem:[#allocation12 + $0x90] sm:$0xff] }
 0x18a   :  { %v2585_v13 = vpack.c.bf16 %v1399_v12, %v1397_v11  ;;  %v560_v11 = vmax.f32 %v3278_v9, 0.0  ;;  %v359_v9 = vmax.f32 %v3229_v28, 0.0 }
 0x18b   :  { %2318 = vmatmul.mubr.msk.f32.gmra.mrb[2].mxu1 %vm169_vm0, %v350_v15  ;;  %v314_v15 = vadd.f32 %v3207_v53, %v3211_v55  ;;  %v2589_v53 = vpack.c.bf16 %v1499_v21, %v1497_v48  ;;  %v2043_v48 = vld [vmem:[#allocation13 + $0xf8] sm:$0xff] }
 0x18c   :  { %1063 = vmatprep.mubr.f32.mxu1 %v2933_v46 }
 0x18d   :  { %v354_v54 = vmax.f32 %v314_v15, 0.0  ;;  %v360_v15 = vmax.f32 %v3226_v26, 0.0  ;;  %v2129_v26 = vld [vmem:[%s3445_s11 + $0x8] sm:$0xff] }
 0x18f   :  { %2319 = vmatmul.mubr.msk.f32.vlgmr.msra.gmra.mrb[0].mxu1 %vm370_vm1, %v552_v22  ;;  %v1502_v22 = vld [vmem:[#allocation10 + $0x128] sm:$0xff] }
 0x190   :  { %2566 = vmatpush1.bf16.msra.mxu1 %v2565_v49  ;;  %1069 = vmatprep.mubr.f32.mxu1 %v2933_v46  ;;  %v1504_v49 = vld [vmem:[#allocation10 + $0x138] sm:$0xff] }
 0x191   :  { %2568 = vmatprep.subr.bf16.mxu1 %v2567_v27  ;;  %v2591_v55 = vpack.c.bf16 %v1504_v49, %v1502_v22  ;;  %v1501_v27 = vld [vmem:[#allocation10 + $0x120] sm:$0xff]  ;;  %v2026_v22 = vld [vmem:[#allocation13 + $0x70] sm:$0xff]  ;;  %v2027_v49 = vld [vmem:[#allocation13 + $0x78] sm:$0xff] }
 0x192   :  { %v2593_v32 = vpack.c.bf16 %v1503_v20, %v1501_v27  ;;  %v562_v20 = vld [vmem:[%s3442_s8] sm:$0x3] }
 0x193   :  { %2320 = vmatmul.mubr.msk.f32.gmra.mrb[2].mxu1 %vm370_vm1, %v553_v34  ;;  %v1603_v34 = vld [vmem:[#allocation12 + $0xb0] sm:$0xff] }
 0x194   :  { %2570 = vmatpush1.bf16.msra.mxu1 %v2569_v47  ;;  %1167 = vmatprep.mubr.f32.mxu1 %v2933_v46  ;;  %v557_v47 = vmax.f32 %v3255_v35, 0.0  ;;  %v2597_v39 = vpack.c.bf16 %v1603_v34, %v1601_v33  ;;  %v356_v35 = vmax.f32 %v3214_v5, 0.0  ;;  %v2605_v5 = vpack.c.bf16 %v1707_v58, %v1705_v56  ;;  %v2134_v58 = vld [vmem:[%s3445_s11 + $0x30] sm:$0xff] }
 0x195   :  { %2572 = vmatprep.subr.bf16.mxu1 %v2571_v36  ;;  %v1702_v36 = vld [vmem:[#allocation10 + $0x148] sm:$0xff]  ;;  %v2663_v61 = vpack.c.bf16 %v2135_v60, %v2134_v58 }
 0x196   :  { %v2599_v40 = vpack.c.bf16 %v1704_v37, %v1702_v36  ;;  %v2130_v36 = vld [vmem:[%s3445_s11 + $0x10] sm:$0xff]  ;;  %v2131_v37 = vld [vmem:[%s3445_s11 + $0x18] sm:$0xff] }
 0x197   :  { %2321 = vmatmul.mubr.msk.f32.vlgmr.msra.gmra.mrb[0].mxu1 %vm169_vm0, %v351_v43  ;;  %v1706_v43 = vld [vmem:[#allocation10 + $0x168] sm:$0xff] }
 0x198   :  { %2574 = vmatpush1.bf16.msra.mxu1 %v2573_v41  ;;  %1173 = vmatprep.mubr.f32.mxu1 %v2933_v46  ;;  %v1701_v41 = vld [vmem:[#allocation10 + $0x140] sm:$0xff] }
 0x199   :  { %2576 = vmatprep.subr.bf16.mxu1 %v2575_v44  ;;  %v1708_v44 = vld [vmem:[#allocation10 + $0x178] sm:$0xff]  ;;  %v2601_v8 = vpack.c.bf16 %v1703_v42, %v1701_v41  ;;  %v2655_v42 = vpack.c.bf16 %v2131_v37, %v2130_v36 }
 0x19b   :  { %2322 = vmatmul.mubr.msk.f32.gmra.mrb[2].mxu1 %vm169_vm0, %v352_v45  ;;  %v2603_v45 = vpack.c.bf16 %v1708_v44, %v1706_v43  ;;  %v2132_v44 = vld [vmem:[%s3445_s11 + $0x20] sm:$0xff] }
 0x19c   :  { %1267 = vmatprep.mubr.f32.mxu1 %v2933_v46 }
 0x19f   :  { %2323 = vmatmul.mubr.msk.f32.vlgmr.msra.gmra.mrb[0].mxu1 %vm370_vm1, %v554_v62  ;;  %v559_v62 = vmax.f32 %v3264_v57, 0.0  ;;  %v358_v57 = vmax.f32 %v3220_v16, 0.0  ;;  %v2617_v16 = vpack.c.bf16 %v1911_v24, %v1909_v30 }
 0x1a0   :  { %2578 = vmatpush1.bf16.msra.mxu1 %v2577_v51  ;;  %1273 = vmatprep.mubr.f32.mxu1 %v2933_v46  ;;  %v1805_v51 = vld [vmem:[#allocation12 + $0xc0] sm:$0xff] }
 0x1a1   :  { %2580 = vmatprep.subr.bf16.mxu1 %v2579_v0  ;;  %v1906_v0 = vld [vmem:[#allocation10 + $0x188] sm:$0xff]  ;;  %v2609_v1 = vpack.c.bf16 %v1807_v63, %v1805_v51  ;;  %v2138_v51 = vld [vmem:[%s3445_s11 + $0x50] sm:$0xff] }
 0x1a2   :  { %v2611_v3 = vpack.c.bf16 %v1908_v25, %v1906_v0  ;;  %v2139_v63 = vld [vmem:[%s3445_s11 + $0x58] sm:$0xff]  ;;  %v2140_v25 = vld [vmem:[%s3445_s11 + $0x60] sm:$0xff] }
 0x1a3   :  { %2324 = vmatmul.mubr.msk.f32.gmra.mrb[2].mxu1 %vm370_vm1, %v555_v50  ;;  %v1910_v50 = vld [vmem:[#allocation10 + $0x1a8] sm:$0xff]  ;;  %v2671_v0 = vpack.c.bf16 %v2139_v63, %v2138_v51 }
 0x1a4   :  { %2582 = vmatpush1.bf16.msra.mxu1 %v2581_v4  ;;  %1371 = vmatprep.mubr.f32.mxu1 %v2933_v46  ;;  %v1905_v4 = vld [vmem:[#allocation10 + $0x180] sm:$0xff] }
 0x1a5   :  { %2584 = vmatprep.subr.bf16.mxu1 %v2583_v10  ;;  %v1912_v10 = vld [vmem:[#allocation10 + $0x1b8] sm:$0xff]  ;;  %v2613_v18 = vpack.c.bf16 %v1907_v7, %v1905_v4 }
 0x1a6   :  { %v2615_v12 = vpack.c.bf16 %v1912_v10, %v1910_v50  ;;  %v2339_v50 = vld [vmem:[%s3444_s10] ss:$0 sm:$0xff] }
 0x1a7   :  { %2325 = vmatmul.mubr.msk.f32.vlgmr.msra.gmra.mrb[0].mxu1 %vm169_vm0, %v353_v17  ;;  %v2024_v17 = vld [vmem:[#allocation13 + $0x60] sm:$0xff] }
 0x1a8   :  { %2586 = vmatpush1.bf16.msra.mxu1 %v2585_v13  ;;  %1377 = vmatprep.mubr.f32.mxu1 %v2933_v46  ;;  %v561_v13 = vmax.f32 %v3274_v6, 0.0  ;;  %v2042_v6 = vld [vmem:[#allocation13 + $0xf0] sm:$0xff] }
 0x1a9   :  { %2588 = vmatprep.subr.bf16.mxu1 %v2587_v19  ;;  %v2025_v19 = vld [vmem:[#allocation13 + $0x68] sm:$0xff]  ;;  %v2647_v21 = vpack.c.bf16 %v2043_v48, %v2042_v6 }
 0x1aa   :  { %v2341_v48 = vld [vmem:[%s3447_s13] ss:$0 sm:$0xff]  ;;  %s2934_s13 = smov [#allocation15]  }
 0x1ab   :  { %2326 = vmatmul.mubr.msk.f32.gmra.mrb[2].mxu1 %vm169_vm0, %v354_v54  ;;  %v2645_v54 = vpack.c.bf16 %v2025_v19, %v2024_v17  ;;  %s2266_s17 = sshll.u32 %s2934_s13, 4  ;;  %s2267_s17 = int_to_ptr.vmem [resolvable:$true] %s2266_s17 }
 0x1ac   :  { %1471 = vmatprep.mubr.f32.mxu1 %v2933_v46  ;;  %p2896_p7 = scmp.lt.s32.totalorder %s2267_s17, %s2267_s17 }
 0x1ad   :  { %2646 = vmatpush3.bf16.msra.mxu0 %v2645_v54 }
 0x1ae   :  { %2648 = vmatprep.subr.bf16.mxu0 %v2647_v21 }
 0x1af   :  { %2327 = vmatmul.mubr.msk.f32.vlgmr.msra.gmra.mrb[0].mxu1 %vm370_vm1, %v556_v23  ;;  %v2649_v23 = vpack.c.bf16 %v2027_v49, %v2026_v22 }
 0x1b0   :  { %2590 = vmatpush1.bf16.msra.mxu1 %v2589_v53  ;;  %1477 = vmatprep.mubr.f32.mxu1 %v2933_v46  ;;  %v564_v53 = vlaneseq }
 0x1b1   :  { %2592 = vmatprep.subr.bf16.mxu1 %v2591_v55  ;;  %2650 = vmatpush3.bf16.msra.mxu0 %v2649_v23 }
 0x1b2   :  { %v565_v55 = vshrl.u32 %v564_v53, 7 }
 0x1b3   :  { %2328 = vmatmul.mubr.msk.f32.gmra.mrb[2].mxu1 %vm370_vm1, %v557_v47 }
 0x1b4   :  { %2594 = vmatpush1.bf16.msra.mxu1 %v2593_v32  ;;  %1575 = vmatprep.mubr.f32.mxu1 %v2933_v46  ;;  %v566_v27 = vsub.s32 0, %v565_v55  ;;  %v570_v29 = vsub.s32 1, %v565_v55 }
 0x1b5   :  { %2596 = vmatprep.subr.bf16.mxu1 %v2595_v38 }
 0x1b6   :  { %v567_v31 = vrot.slane %v562_v20, %v566_v27  ;;  %v571_v32 = vrot.slane %v562_v20, %v570_v29 }
 0x1b7   :  { %2329 = vmatmul.mubr.msk.f32.vlgmr.msra.gmra.mrb[0].mxu1 %vm169_vm0, %v355_v14 }
 0x1b8   :  { %2598 = vmatpush1.bf16.msra.mxu1 %v2597_v39  ;;  %1581 = vmatprep.mubr.f32.mxu1 %v2933_v46 }
 0x1b9   :  { %2600 = vmatprep.subr.bf16.mxu1 %v2599_v40 }
 0x1bb   :  { %2330 = vmatmul.mubr.msk.f32.gmra.mrb[2].mxu1 %vm169_vm0, %v356_v35 }
 0x1bc   :  { %1675 = vmatprep.mubr.f32.mxu1 %v2933_v46 }
 0x1bf   :  { %2331 = vmatmul.mubr.msk.f32.vlgmr.msra.gmra.mrb[0].mxu1 %vm370_vm1, %v558_v52  ;;  %v2133_v52 = vld [vmem:[%s3445_s11 + $0x28] sm:$0xff] }
 0x1c0   :  { %2602 = vmatpush1.bf16.msra.mxu1 %v2601_v8  ;;  %1681 = vmatprep.mubr.f32.mxu1 %v2933_v46  ;;  %v2659_v56 = vpack.c.bf16 %v2133_v52, %v2132_v44 }
 0x1c1   :  { %2604 = vmatprep.subr.bf16.mxu1 %v2603_v45 }
 0x1c3   :  { %2332 = vmatmul.mubr.msk.f32.gmra.mrb[2].mxu1 %vm370_vm1, %v559_v62  ;;  %v2137_v62 = vld [vmem:[%s3445_s11 + $0x48] sm:$0xff] }
 0x1c4   :  { %2606 = vmatpush1.bf16.msra.mxu1 %v2605_v5  ;;  %1779 = vmatprep.mubr.f32.mxu1 %v2933_v46  ;;  %v2136_v5 = vld [vmem:[%s3445_s11 + $0x40] sm:$0xff] }
 0x1c5   :  { %2608 = vmatprep.subr.bf16.mxu1 %v2607_v59  ;;  %v2667_v59 = vpack.c.bf16 %v2137_v62, %v2136_v5 }
 0x1c7   :  { %2333 = vmatmul.mubr.msk.f32.vlgmr.msra.gmra.mrb[0].mxu1 %vm169_vm0, %v357_v2 }
 0x1c8   :  { %2610 = vmatpush1.bf16.msra.mxu1 %v2609_v1  ;;  %1785 = vmatprep.mubr.f32.mxu1 %v2933_v46  ;;  %v2141_v1 = vld [vmem:[%s3445_s11 + $0x68] sm:$0xff] }
 0x1c9   :  { %2612 = vmatprep.subr.bf16.mxu1 %v2611_v3  ;;  %v2675_v2 = vpack.c.bf16 %v2141_v1, %v2140_v25  ;;  %v2142_v3 = vld [vmem:[%s3445_s11 + $0x70] sm:$0xff] }
 0x1cb   :  { %2334 = vmatmul.mubr.msk.f32.gmra.mrb[2].mxu1 %vm169_vm0, %v358_v57  ;;  %v2143_v57 = vld [vmem:[%s3445_s11 + $0x78] sm:$0xff] }
 0x1cc   :  { %1879 = vmatprep.mubr.f32.mxu1 %v2933_v46  ;;  %v2679_v4 = vpack.c.bf16 %v2143_v57, %v2142_v3 }
 0x1cf   :  { %2335 = vmatmul.mubr.msk.f32.vlgmr.msra.gmra.mrb[0].mxu1 %vm370_vm1, %v560_v11 }
 0x1d0   :  { %2614 = vmatpush1.bf16.msra.mxu1 %v2613_v18  ;;  %1885 = vmatprep.mubr.f32.mxu1 %v2933_v46 }
 0x1d1   :  { %2616 = vmatprep.subr.bf16.mxu1 %v2615_v12 }
 0x1d3   :  { %2336 = vmatmul.mubr.msk.f32.gmra.mrb[2].mxu1 %vm370_vm1, %v561_v13 }
 0x1d4   :  { %2618 = vmatpush1.bf16.msra.mxu1 %v2617_v16  ;;  %1983 = vmatprep.mubr.f32.mxu1 %v2933_v46 }
 0x1d7   :  { %2337 = vmatmul.mubr.msk.f32.vlgmr.msra.gmra.mrb[0].mxu1 %vm169_vm0, %v359_v9 }
 0x1d8   :  { %1989 = vmatprep.mubr.f32.mxu1 %v2933_v46  ;;  %v2128_v46 = vld [vmem:[%s3445_s11] sm:$0xff] }
 0x1d9   :  { %v2651_v28 = vpack.c.bf16 %v2129_v26, %v2128_v46 }
 0x1db   :  { %2338 = vmatmul.mubr.msk.f32.gmra.mrb[2].mxu1 %vm169_vm0, %v360_v15  ;;  %2652 = vmatprep.subr.bf16.mxu0 %v2651_v28  ;;  %v2340_v15 = vld [vmem:[%s3446_s12] ss:$0 sm:$0xff] }
 0x2aa   :  { %v1985_v47 = vpop.f32.mrb[0].mxu1 }
 0x2ab   :  { %v2683_v38 = vadd.f32 %v1985_v47, %v567_v31  ;;  %v1987_v33 = vpop.f32.mrb[1].mxu1 }
 0x2ac   :  { %v2684_v34 = vadd.f32 %v1987_v33, %v571_v32 }
 0x2ad   :  { %v2008_v40 = vmax.f32 %v2683_v38, 0.0 }
 0x2ae   :  { %v2009_v39 = vmax.f32 %v2684_v34, 0.0  ;;  %v1991_v14 = vpop.f32.mrb[2].mxu1 }
 0x2af   :  { %v2685_v35 = vadd.f32 %v1991_v14, %v567_v31  ;;  %v1993_v41 = vpop.f32.mrb[3].mxu1 }
 0x2b0   :  { %v2686_v43 = vadd.f32 %v1993_v41, %v571_v32  ;;  %2115 = vmatprep.mubr.f32.mxu0 %v2009_v39 }
 0x2b1   :  { %2116 = vmatmul.mubr.f32.vlgmr.msra.gmra.mrb[28].mxu0 %v2008_v40  ;;  %v2010_v45 = vmax.f32 %v2685_v35, 0.0 }
 0x2b2   :  { %v2011_v8 = vmax.f32 %v2686_v43, 0.0  ;;  %2654 = vmatpush3.bf16.msra.mxu0 %v2651_v28  ;;  %v2244_v28 = vstv %s3448_s14  ;;  %s2891_s14 = scalar_lea.vmem %s2267_s17, 256 }
 0x2b3   :  { %2656 = vmatprep.subr.bf16.mxu0 %v2655_v42  ;;  %p2892_p6 = scmp.ne.s32.totalorder %s2267_s17, %s2891_s14  ;;  %p2897_p8 = scmp.lt.s32.totalorder %s2891_s14, %s2891_s14 }
 0x2b4   :  { %2120 = vmatprep.mubr.f32.mxu0 %v2011_v8 }
 0x2b5   :  { %2121 = vmatmul.mubr.f32.gmra.mrb[30].mxu0 %v2010_v45  ;;  %p2898_p9 = por %p2897_p8, %p2896_p7 }
 0x2b6   :  { %2658 = vmatpush3.bf16.msra.mxu0 %v2655_v42 }
 0x2b7   :  { %2660 = vmatprep.subr.bf16.mxu0 %v2659_v56  ;;  %p2899_p10 = pnand %p2898_p9, %p2892_p6 }
 0x2ba   :  { %2662 = vmatpush3.bf16.msra.mxu0 %v2659_v56 }
 0x2bb   :  { %2664 = vmatprep.subr.bf16.mxu0 %v2663_v61 }
 0x2be   :  { %2666 = vmatpush3.bf16.msra.mxu0 %v2663_v61 }
 0x2bf   :  { %2668 = vmatprep.subr.bf16.mxu0 %v2667_v59 }
 0x2c2   :  { %2670 = vmatpush3.bf16.msra.mxu0 %v2667_v59 }
 0x2c3   :  { %2672 = vmatprep.subr.bf16.mxu0 %v2671_v0 }
 0x2c6   :  { %2674 = vmatpush3.bf16.msra.mxu0 %v2671_v0 }
 0x2c7   :  { %2676 = vmatprep.subr.bf16.mxu0 %v2675_v2 }
 0x2ca   :  { %2678 = vmatpush3.bf16.msra.mxu0 %v2675_v2 }
 0x2cb   :  { %2680 = vmatprep.subr.bf16.mxu0 %v2679_v4 }
 0x2ce   :  { %2682 = vmatpush3.bf16.msra.mxu0 %v2679_v4 }
 0x384   :  { %v2410_v7 = vpop.f32.mrb[28].mxu0 }
 0x385   :  { %v2411_v10 = vpop.f32.mrb[29].mxu0 }
 0x386   :  { %v2412_v11 = vadd.f32 %v2411_v10, %v2410_v7 }
 0x388   :  { %v2118_v18 = vadd.f32 %v2412_v11, %v2339_v50  ;;  %v2413_v12 = vpop.f32.mrb[30].mxu0 }
 0x389   :  { %v2414_v30 = vpop.f32.mrb[31].mxu0 }
 0x38a   :  { %v2126_v24 = vmax.f32 %v2118_v18, 0.0  ;;  %v2415_v16 = vadd.f32 %v2414_v30, %v2413_v12 }
 0x38c   :  { %v2123_v13 = vadd.f32 %v2415_v16, %v2339_v50  ;;  %2520 = vmatprep.mubr.f32.mxu0 %v2126_v24 }
 0x38e   :  { %v2127_v9 = vmax.f32 %v2123_v13, 0.0 }
 0x390   :  { %2521 = vmatmul.mubr.f32.vlgmr.msra.gmra.mrb[32].mxu0 %v2127_v9 }
 0x463   :  { %v2522_v17 = vpop.f32.mrb[32].mxu0 }
 0x464   :  { %v2223_v19 = vadd.f32 %v2522_v17, %v2340_v15  ;;  %v2217_v54 = vpop.f32.mrb[33].mxu0 }
 0x465   :  { %v2218_v6 = vadd.f32 %v2340_v15, %v2217_v54 }
 0x466   :  { %v2227_v21 = vmax.f32 %v2223_v19, 0.0 }
 0x467   :  { %v2226_v22 = vmax.f32 %v2218_v6, 0.0 }
 0x468   :  { %v2236_v46 = vmul.f32 %v2341_v48, %v2227_v21 }
 0x469   :  { %v2235_v49 = vmul.f32 %v2341_v48, %v2226_v22 }
 0x46a   :  { %v2240_v26 = vsel %vm370_vm1, %v2236_v46, 0.0 }
 0x46b   :  { %v2237_v23 = vsel %vm370_vm1, %v2235_v49, 0.0 }
 0x46c   :  { %2238 = vadd.xlane.f32.xlu0 %v2237_v23 }
 0x470   :  { %2241 = vadd.xlane.f32.xlu0 %v2240_v26 }
 0x4f9   :  { %v2239_v53 = vpop.xlane.xlu0 %2238 }
 0x4fa   :  { %v2245_v55 = vadd.f32 %v2244_v28, %v2239_v53 }
 0x4fc   :  { %v2342_v27 = vmul.f32 -1.442695, %v2245_v55 }
 0x4fd   :  { %v2242_v20 = vpop.xlane.xlu0 %2241 }
 0x4fe   :  { %2751 = vpow2.f32 %v2342_v27  ;;  %v2246_v29 = vadd.f32 %v2244_v28, %v2242_v20 }
 0x500   :  { %v2343_v31 = vmul.f32 -1.442695, %v2246_v29 }
 0x502   :  { %2753 = vpow2.f32 %v2343_v31 }
 0x508   :  { %v2752_v32 = vpop.eup %2751 }
 0x509   :  { %v2253_v47 = vadd.f32 1.0, %v2752_v32 }
 0x50b   :  { %2755 = vrcp.f32 %v2253_v47 }
 0x50c   :  { %v2754_v38 = vpop.eup %2753 }
 0x50d   :  { %v2254_v33 = vadd.f32 1.0, %v2754_v38 }
 0x50f   :  { %2757 = vrcp.f32 %v2254_v33 }
 0x515   :  { %v2756_v34 = vpop.eup %2755 }
 0x516   :  { %2259 = vst [vmem:[#allocation15] sm:$0xff] %v2756_v34 }
 0x519   :  { %v2758_v36 = vpop.eup %2757 }
 0x51a   :  { %2260 = vst [vmem:[#allocation15 + $0x8] sm:$0xff] %v2758_v36 }
 0x51b   :  { %2902 = shalt.err (!%p2899_p10)
}
 0x51c   :  { %s2903_s20 = scalar_lea.hbm %s3449_s15, 256 }
 0x51d   :  { %p2904_p11 = scmp.ne.s32.totalorder %s3449_s15, %s2903_s20  ;;  %p2907_p12 = scmp.lt.u32.totalorder %s2903_s20, %s3449_s15 }
 0x51f   :  { %p2909_p13 = pnand %p2907_p12, %p2904_p11 }
 0x521   :  { %2912 = shalt.err (!%p2909_p13)
}
 0x522   :  { %2272 = dma.vmem_to_hbm [thread:$0]  %s2267_s17, 256, %s3449_s15, [#allocation6], %s2928_s6, %s2928_s6, %s2929_s21  }
 0x523   :  { %2921 = dma.done.wait [#allocation6], 256  }
 0x524   :  { %2922 = vsyncadd [#allocation6], 4294967040 }
 0x525   :  { %2276 = vsyncpa [#allocation5], 1 }
 0x526   :  { %2277 = vsyncpa [#allocation8], 1 }
 0x527   :  { %2278 = vsyncpa [#allocation11], 1 }
 0x528   :  { %2279 = vsyncpa [#allocation14], 1 }
 0x529   :  { %2280 = vsyncpa [#allocation6], 1 }

</bundles_post_ra>
